<compile_context>
chip_gen: v5e
topology: v5e:2x2
jax: 0.10.0
libtpu: 0.0.40
codegen_flags: <defaults>
</compile_context>

<pallas_src>
import functools
import numpy as np
import jax
import jax.numpy as jnp
from jax import lax
from jax.experimental import pallas as pl
from jax.experimental.pallas import tpu as pltpu

# ---------------- model hyper-parameters (small, consistent with the module) -------------
VOCAB_SIZE = 100
EMBED_SIZE = 32
NUM_HEADS = 4
HIDDEN_DIM = 64
NUM_LAYERS = 2
MAX_LENGTH = 16
BATCH = 2
SEQ = 8
LN_EPS = 1e-12


def _layer_norm(x, gamma, beta, eps):
    # PyTorch LayerNorm over last dim, biased variance; rsqrt -> EUP slot.
    mu = jnp.mean(x, axis=-1, keepdims=True)
    var = jnp.mean((x - mu) ** 2, axis=-1, keepdims=True)
    return (x - mu) * lax.rsqrt(var + eps) * gamma + beta


def _gelu_exact(x):
    # nn.GELU() default: exact erf-based GELU.
    return 0.5 * x * (1.0 + lax.erf(x / jnp.sqrt(jnp.float32(2.0))))


# ---------------- the fused Pallas kernel --------------------------------------------------

def fused_transformer_kernel(
        xemb_ref, eg_ref, eb_ref,                       # embeddings (summed) + embed LN
        wqkv_ref, bqkv_ref, wo_ref, bo_ref,             # attention (per-layer block)
        g1_ref, be1_ref,                                # LN1
        w1_ref, bf1_ref, w2_ref, bf2_ref,               # feed-forward
        g2_ref, be2_ref,                                # LN2
        o_ref,                                          # (B, E) CLS output (resident)
        x_sc,                                           # (B*S, E) resident activation
        *, batch, seq, num_heads, eps):
    l = pl.program_id(0)

    # ---- layer-0 prologue: embedding LayerNorm into the resident activation ----
    @pl.when(l == 0)
    def _():
        x_sc[...] = _layer_norm(xemb_ref[...], eg_ref[...], eb_ref[...], eps)

    x = x_sc[...]                                       # (B*S, E)
    BS, E = x.shape
    dh = E // num_heads
    scale = 1.0 / jnp.sqrt(jnp.float32(dh))

    # ---- multi-head self-attention (mask=None path) ----
    # fused QKV: one (BS, E) x (E, 3E) matmul
    qkv = jnp.dot(x, wqkv_ref[0], preferred_element_type=jnp.float32) + bqkv_ref[0]
    wo = wo_ref[0]                                      # (E, E)

    attn = jnp.zeros((BS, E), jnp.float32)
    for h in range(num_heads):                          # static, tiny (4) — all in one launch
        qh = qkv[:, h * dh:(h + 1) * dh].reshape(batch, seq, dh)
        kh = qkv[:, E + h * dh:E + (h + 1) * dh].reshape(batch, seq, dh)
        vh = qkv[:, 2 * E + h * dh:2 * E + (h + 1) * dh].reshape(batch, seq, dh)
        s = jnp.einsum("bqd,bkd->bqk", qh, kh,
                       preferred_element_type=jnp.float32) * scale       # (B, S, S)
        m = jnp.max(s, axis=-1, keepdims=True)
        e = jnp.exp(s - m)
        p = e * pl.reciprocal(jnp.sum(e, axis=-1, keepdims=True), approx=False)
        oh = jnp.einsum("bqk,bkd->bqd", p, vh,
                        preferred_element_type=jnp.float32)              # (B, S, dh)
        # fold head output directly into the output projection (no concatenate):
        # concat_h(head_h) @ Wo == sum_h head_h @ Wo[h*dh:(h+1)*dh, :]
        attn = attn + jnp.dot(oh.reshape(BS, dh), wo[h * dh:(h + 1) * dh, :],
                              preferred_element_type=jnp.float32)
    attn = attn + bo_ref[0]

    # ---- residual + LayerNorm 1 (dropout = identity in eval) ----
    x1 = _layer_norm(x + attn, g1_ref[0], be1_ref[0], eps)

    # ---- feed-forward ----
    hdn = _gelu_exact(jnp.dot(x1, w1_ref[0], preferred_element_type=jnp.float32) + bf1_ref[0])
    ff = jnp.dot(hdn, w2_ref[0], preferred_element_type=jnp.float32) + bf2_ref[0]

    # ---- residual + LayerNorm 2 ----
    x2 = _layer_norm(x1 + ff, g2_ref[0], be2_ref[0], eps)

    x_sc[...] = x2                                      # carry to next layer step

    # CLS pooling (output_mode='sentence', pooling='cls'): rows b*seq, b=0..B-1.
    # Output block index is constant across the layer axis -> written to HBM once.
    o_ref[...] = jnp.concatenate(
        [x2[b * seq:b * seq + 1, :] for b in range(batch)], axis=0)


# ---------------- wrapper -------------------------------------------------------------------

def sentence_transformer_forward(input_ids, params):
    B, S = input_ids.shape
    E, H, L = EMBED_SIZE, HIDDEN_DIM, NUM_LAYERS

    # Embedding gathers stay in plain JAX (glue); everything else runs in one Pallas call.
    tok = params["tok_emb"][input_ids]                  # (B, S, E)
    pos = params["pos_emb"][:S][None, :, :]             # (1, S, E)
    typ = params["type_emb"][0][None, None, :]          # token_type_ids all zero
    xemb = (tok + pos + typ).reshape(B * S, E)          # (B*S, E)

    def const_spec(shape):
        return pl.BlockSpec(shape, lambda l: (0,) * len(shape))

    def layer_spec(shape):
        return pl.BlockSpec((1,) + shape, lambda l: (l, 0, 0))

    out = pl.pallas_call(
        functools.partial(fused_transformer_kernel, batch=B, seq=S,
                          num_heads=NUM_HEADS, eps=LN_EPS),
        out_shape=jax.ShapeDtypeStruct((B, E), jnp.float32),
        grid=(L,),
        in_specs=[
            const_spec((B * S, E)),                     # summed embeddings (resident)
            const_spec((1, E)), const_spec((1, E)),     # embed LN gamma/beta
            layer_spec((E, 3 * E)), layer_spec((1, 3 * E)),   # Wqkv, bqkv
            layer_spec((E, E)), layer_spec((1, E)),           # Wo, bo
            layer_spec((1, E)), layer_spec((1, E)),           # LN1 gamma/beta
            layer_spec((E, H)), layer_spec((1, H)),           # FF W1, b1
            layer_spec((H, E)), layer_spec((1, E)),           # FF W2, b2
            layer_spec((1, E)), layer_spec((1, E)),           # LN2 gamma/beta
        ],
        out_specs=pl.BlockSpec((B, E), lambda l: (0, 0)),     # resident across layer axis
        scratch_shapes=[pltpu.VMEM((B * S, E), jnp.float32)], # resident activation
        compiler_params=pltpu.CompilerParams(dimension_semantics=("arbitrary",)),
    )(xemb, params["emb_g"], params["emb_b"],
      params["wqkv"], params["bqkv"], params["wo"], params["bo"],
      params["g1"], params["be1"], params["w1"], params["bf1"],
      params["w2"], params["bf2"], params["g2"], params["be2"])
    return out


# ---------------- pure-JAX reference (for a correctness check) -----------------------------

def reference_forward(input_ids, params):
    B, S = input_ids.shape
    E = EMBED_SIZE
    dh = E // NUM_HEADS

    def ln(t, g, b):
        mu = t.mean(-1, keepdims=True)
        var = ((t - mu) ** 2).mean(-1, keepdims=True)
        return (t - mu) / jnp.sqrt(var + LN_EPS) * g + b

    x = (params["tok_emb"][input_ids]
         + params["pos_emb"][:S][None, :, :]
         + params["type_emb"][0][None, None, :])
    x = ln(x, params["emb_g"][0], params["emb_b"][0])

    for l in range(NUM_LAYERS):
        wqkv, bqkv = params["wqkv"][l], params["bqkv"][l][0]
        qkv = x @ wqkv + bqkv
        q, k, v = qkv[..., :E], qkv[..., E:2 * E], qkv[..., 2 * E:]

        def split(t):
            return t.reshape(B, S, NUM_HEADS, dh).transpose(0, 2, 1, 3)

        qh, kh, vh = split(q), split(k), split(v)
        s = jnp.einsum("bhqd,bhkd->bhqk", qh, kh) / jnp.sqrt(jnp.float32(dh))
        w = jax.nn.softmax(s, axis=-1)
        a = jnp.einsum("bhqk,bhkd->bhqd", w, vh).transpose(0, 2, 1, 3).reshape(B, S, E)
        a = a @ params["wo"][l] + params["bo"][l][0]
        x = ln(x + a, params["g1"][l][0], params["be1"][l][0])
        h = _gelu_exact(x @ params["w1"][l] + params["bf1"][l][0])
        f = h @ params["w2"][l] + params["bf2"][l][0]
        x = ln(x + f, params["g2"][l][0], params["be2"][l][0])
    return x[:, 0, :]


# ---------------- deterministic parameter init ----------------------------------------------

def init_params(key):
    E, H, L = EMBED_SIZE, HIDDEN_DIM, NUM_LAYERS
    ks = jax.random.split(key, 20)

    def rnd(k, shape, s):
        return s * jax.random.normal(k, shape, jnp.float32)

    wq = rnd(ks[5], (L, E, E), 0.05)
    wk = rnd(ks[6], (L, E, E), 0.05)
    wv = rnd(ks[7], (L, E, E), 0.05)
    return {
        "tok_emb": rnd(ks[0], (VOCAB_SIZE, E), 0.02),
        "pos_emb": rnd(ks[1], (MAX_LENGTH, E), 0.02),
        "type_emb": rnd(ks[2], (2, E), 0.02),
        "emb_g": 1.0 + rnd(ks[3], (1, E), 0.05),
        "emb_b": rnd(ks[4], (1, E), 0.02),
        "wqkv": jnp.concatenate([wq, wk, wv], axis=-1),        # (L, E, 3E)
        "bqkv": rnd(ks[8], (L, 1, 3 * E), 0.02),
        "wo": rnd(ks[9], (L, E, E), 0.05),
        "bo": rnd(ks[10], (L, 1, E), 0.02),
        "g1": 1.0 + rnd(ks[11], (L, 1, E), 0.05),
        "be1": rnd(ks[12], (L, 1, E), 0.02),
        "w1": rnd(ks[13], (L, E, H), 0.05),
        "bf1": rnd(ks[14], (L, 1, H), 0.02),
        "w2": rnd(ks[15], (L, H, E), 0.05),
        "bf2": rnd(ks[16], (L, 1, E), 0.02),
        "g2": 1.0 + rnd(ks[17], (L, 1, E), 0.05),
        "be2": rnd(ks[18], (L, 1, E), 0.02),
    }


if __name__ == "__main__":
    root = jax.random.PRNGKey(0)
    param_key, input_key = jax.random.split(root)
    params = init_params(param_key)
    input_ids = jax.random.randint(input_key, (BATCH, SEQ), 0, VOCAB_SIZE, dtype=jnp.int32)

    out = jax.block_until_ready(sentence_transformer_forward(input_ids, params))
    ref = jax.block_until_ready(reference_forward(input_ids, params))

    assert out.shape == (BATCH, EMBED_SIZE)
    np.testing.assert_allclose(np.asarray(out), np.asarray(ref), atol=3e-4, rtol=3e-4)

    print("KERNEL_OK")
</pallas_src>

<mosaic_0001>
module attributes {stable_mosaic.version = 11 : i64} {
  func.func @fused_transformer_kernel(%arg0: i32, %arg1: memref<16x32xf32, #tpu.memory_space<vmem>>, %arg2: memref<1x32xf32, #tpu.memory_space<vmem>>, %arg3: memref<1x32xf32, #tpu.memory_space<vmem>>, %arg4: memref<1x32x96xf32, #tpu.memory_space<vmem>>, %arg5: memref<1x1x96xf32, #tpu.memory_space<vmem>>, %arg6: memref<1x32x32xf32, #tpu.memory_space<vmem>>, %arg7: memref<1x1x32xf32, #tpu.memory_space<vmem>>, %arg8: memref<1x1x32xf32, #tpu.memory_space<vmem>>, %arg9: memref<1x1x32xf32, #tpu.memory_space<vmem>>, %arg10: memref<1x32x64xf32, #tpu.memory_space<vmem>>, %arg11: memref<1x1x64xf32, #tpu.memory_space<vmem>>, %arg12: memref<1x64x32xf32, #tpu.memory_space<vmem>>, %arg13: memref<1x1x32xf32, #tpu.memory_space<vmem>>, %arg14: memref<1x1x32xf32, #tpu.memory_space<vmem>>, %arg15: memref<1x1x32xf32, #tpu.memory_space<vmem>>, %arg16: memref<2x32xf32, #tpu.memory_space<vmem>>, %arg17: memref<16x32xf32, #tpu.memory_space<vmem>>) attributes {dimension_semantics = [#tpu.dimension_semantics<arbitrary>], iteration_bounds = array<i64: 2>, scalar_prefetch = 0 : i64, scratch_operands = 1 : i64, tpu.core_type = #tpu.core_type<tc>, window_params = [{pipeline_mode = #tpu.pipeline_mode<synchronous>, transform_indices = @transform_0, window_bounds = array<i64: 16, 32>}, {pipeline_mode = #tpu.pipeline_mode<synchronous>, transform_indices = @transform_1, window_bounds = array<i64: 1, 32>}, {pipeline_mode = #tpu.pipeline_mode<synchronous>, transform_indices = @transform_2, window_bounds = array<i64: 1, 32>}, {transform_indices = @transform_3, window_bounds = array<i64: 1, 32, 96>}, {transform_indices = @transform_4, window_bounds = array<i64: 1, 1, 96>}, {transform_indices = @transform_5, window_bounds = array<i64: 1, 32, 32>}, {transform_indices = @transform_6, window_bounds = array<i64: 1, 1, 32>}, {transform_indices = @transform_7, window_bounds = array<i64: 1, 1, 32>}, {transform_indices = @transform_8, window_bounds = array<i64: 1, 1, 32>}, {transform_indices = @transform_9, window_bounds = array<i64: 1, 32, 64>}, {transform_indices = @transform_10, window_bounds = array<i64: 1, 1, 64>}, {transform_indices = @transform_11, window_bounds = array<i64: 1, 64, 32>}, {transform_indices = @transform_12, window_bounds = array<i64: 1, 1, 32>}, {transform_indices = @transform_13, window_bounds = array<i64: 1, 1, 32>}, {transform_indices = @transform_14, window_bounds = array<i64: 1, 1, 32>}, {pipeline_mode = #tpu.pipeline_mode<synchronous>, transform_indices = @transform_15, window_bounds = array<i64: 2, 32>}]} {
    %c0_i32 = arith.constant 0 : i32
    %0 = arith.cmpi eq, %arg0, %c0_i32 : i32
    %1 = arith.extui %0 : i1 to i32
    %c0_i32_0 = arith.constant 0 : i32
    %2 = arith.cmpi ne, %1, %c0_i32_0 : i32
    scf.if %2 {
      %c0_80 = arith.constant 0 : index
      %c0_81 = arith.constant 0 : index
      %198 = vector.load %arg1[%c0_80, %c0_81] : memref<16x32xf32, #tpu.memory_space<vmem>>, vector<16x32xf32>
      %c0_82 = arith.constant 0 : index
      %c0_83 = arith.constant 0 : index
      %199 = vector.load %arg2[%c0_82, %c0_83] : memref<1x32xf32, #tpu.memory_space<vmem>>, vector<1x32xf32>
      %c0_84 = arith.constant 0 : index
      %c0_85 = arith.constant 0 : index
      %200 = vector.load %arg3[%c0_84, %c0_85] : memref<1x32xf32, #tpu.memory_space<vmem>>, vector<1x32xf32>
      %cst_86 = arith.constant dense<0.000000e+00> : vector<16xf32>
      %201 = vector.multi_reduction <add>, %198, %cst_86 [1] : vector<16x32xf32> to vector<16xf32>
      %202 = vector.shape_cast %201 : vector<16xf32> to vector<16x1xf32>
      %cst_87 = arith.constant 3.200000e+01 : f32
      %203 = vector.broadcast %cst_87 : f32 to vector<16x1xf32>
      %204 = arith.divf %202, %203 : vector<16x1xf32>
      %205 = vector.broadcast %204 : vector<16x1xf32> to vector<16x32xf32>
      %206 = arith.subf %198, %205 : vector<16x32xf32>
      %207 = arith.mulf %206, %206 : vector<16x32xf32>
      %cst_88 = arith.constant dense<0.000000e+00> : vector<16xf32>
      %208 = vector.multi_reduction <add>, %207, %cst_88 [1] : vector<16x32xf32> to vector<16xf32>
      %209 = vector.shape_cast %208 : vector<16xf32> to vector<16x1xf32>
      %cst_89 = arith.constant 3.200000e+01 : f32
      %210 = vector.broadcast %cst_89 : f32 to vector<16x1xf32>
      %211 = arith.divf %209, %210 : vector<16x1xf32>
      %212 = vector.broadcast %204 : vector<16x1xf32> to vector<16x32xf32>
      %213 = arith.subf %198, %212 : vector<16x32xf32>
      %cst_90 = arith.constant 9.99999996E-13 : f32
      %214 = vector.broadcast %cst_90 : f32 to vector<16x1xf32>
      %215 = arith.addf %211, %214 : vector<16x1xf32>
      %216 = math.rsqrt %215 : vector<16x1xf32>
      %217 = vector.broadcast %216 : vector<16x1xf32> to vector<16x32xf32>
      %218 = arith.mulf %213, %217 : vector<16x32xf32>
      %219 = vector.broadcast %199 : vector<1x32xf32> to vector<16x32xf32>
      %220 = arith.mulf %218, %219 : vector<16x32xf32>
      %221 = vector.broadcast %200 : vector<1x32xf32> to vector<16x32xf32>
      %222 = arith.addf %220, %221 : vector<16x32xf32>
      %c0_91 = arith.constant 0 : index
      %c0_92 = arith.constant 0 : index
      %223 = vector.load %arg17[%c0_91, %c0_92] : memref<16x32xf32, #tpu.memory_space<vmem>>, vector<16x32xf32>
      tpu.vector_store %arg17[%c0_91, %c0_92], %222 {strides = array<i32>} : memref<16x32xf32, #tpu.memory_space<vmem>>, vector<16x32xf32>,
    } else {
    }
    %c0 = arith.constant 0 : index
    %c0_1 = arith.constant 0 : index
    %3 = vector.load %arg17[%c0, %c0_1] : memref<16x32xf32, #tpu.memory_space<vmem>>, vector<16x32xf32>
    %cst = arith.constant 8.000000e+00 : f32
    %4 = math.sqrt %cst : f32
    %cst_2 = arith.constant 1.000000e+00 : f32
    %5 = arith.divf %cst_2, %4 : f32
    %c0_3 = arith.constant 0 : index
    %c0_4 = arith.constant 0 : index
    %c0_5 = arith.constant 0 : index
    %6 = vector.load %arg4[%c0_3, %c0_4, %c0_5] : memref<1x32x96xf32, #tpu.memory_space<vmem>>, vector<1x32x96xf32>
    %7 = vector.shape_cast %6 : vector<1x32x96xf32> to vector<32x96xf32>
    %cst_6 = arith.constant dense<0.000000e+00> : vector<16x96xf32>
    %8 = tpu.matmul %3, %7, %cst_6 {dimension_numbers = #tpu.dot_dimension_numbers<[1], [0], [0], [1], [0, 0, 1, 1], [], []>} : vector<16x32xf32>, vector<32x96xf32>, vector<16x96xf32> -> vector<16x96xf32>
    %c0_7 = arith.constant 0 : index
    %c0_8 = arith.constant 0 : index
    %c0_9 = arith.constant 0 : index
    %9 = vector.load %arg5[%c0_7, %c0_8, %c0_9] : memref<1x1x96xf32, #tpu.memory_space<vmem>>, vector<1x1x96xf32>
    %10 = vector.shape_cast %9 : vector<1x1x96xf32> to vector<1x96xf32>
    %11 = vector.broadcast %10 : vector<1x96xf32> to vector<16x96xf32>
    %12 = arith.addf %8, %11 : vector<16x96xf32>
    %c0_10 = arith.constant 0 : index
    %c0_11 = arith.constant 0 : index
    %c0_12 = arith.constant 0 : index
    %13 = vector.load %arg6[%c0_10, %c0_11, %c0_12] : memref<1x32x32xf32, #tpu.memory_space<vmem>>, vector<1x32x32xf32>
    %14 = vector.shape_cast %13 : vector<1x32x32xf32> to vector<32x32xf32>
    %cst_13 = arith.constant 0.000000e+00 : f32
    %15 = vector.broadcast %cst_13 : f32 to vector<16x32xf32>
    %16 = vector.extract_strided_slice %12 {offsets = [0, 0], sizes = [16, 8], strides = [1, 1]} : vector<16x96xf32> to vector<16x8xf32>
    %17 = vector.shape_cast %16 : vector<16x8xf32> to vector<2x8x8xf32>
    %18 = vector.extract_strided_slice %12 {offsets = [0, 32], sizes = [16, 8], strides = [1, 1]} : vector<16x96xf32> to vector<16x8xf32>
    %19 = vector.shape_cast %18 : vector<16x8xf32> to vector<2x8x8xf32>
    %20 = vector.extract_strided_slice %12 {offsets = [0, 64], sizes = [16, 8], strides = [1, 1]} : vector<16x96xf32> to vector<16x8xf32>
    %21 = vector.shape_cast %20 : vector<16x8xf32> to vector<2x8x8xf32>
    "tpu.trace_start"() <{level = 10 : i32, message = "bqd,bkd->bqk"}> : () -> ()
    %cst_14 = arith.constant dense<0.000000e+00> : vector<2x8x8xf32>
    %22 = tpu.matmul %17, %19, %cst_14 {dimension_numbers = #tpu.dot_dimension_numbers<[2], [2], [1], [1], [0, 0, 0, 1, 1, 1], [0], [0]>} : vector<2x8x8xf32>, vector<2x8x8xf32>, vector<2x8x8xf32> -> vector<2x8x8xf32>
    "tpu.trace_stop"() : () -> ()
    %23 = vector.broadcast %5 : f32 to vector<2x8x8xf32>
    %24 = arith.mulf %22, %23 : vector<2x8x8xf32>
    %cst_15 = arith.constant dense<0xFF800000> : vector<2x8xf32>
    %25 = vector.multi_reduction <maximumf>, %24, %cst_15 [2] : vector<2x8x8xf32> to vector<2x8xf32>
    %26 = vector.shape_cast %25 : vector<2x8xf32> to vector<2x8x1xf32>
    %27 = vector.broadcast %26 : vector<2x8x1xf32> to vector<2x8x8xf32>
    %28 = arith.subf %24, %27 : vector<2x8x8xf32>
    %29 = math.exp %28 : vector<2x8x8xf32>
    %cst_16 = arith.constant dense<0.000000e+00> : vector<2x8xf32>
    %30 = vector.multi_reduction <add>, %29, %cst_16 [2] : vector<2x8x8xf32> to vector<2x8xf32>
    %31 = vector.shape_cast %30 : vector<2x8xf32> to vector<2x8x1xf32>
    %32 = tpu.reciprocal %31 : vector<2x8x1xf32> -> vector<2x8x1xf32>
    %33 = vector.broadcast %32 : vector<2x8x1xf32> to vector<2x8x8xf32>
    %34 = arith.mulf %29, %33 : vector<2x8x8xf32>
    "tpu.trace_start"() <{level = 10 : i32, message = "bqk,bkd->bqd"}> : () -> ()
    %cst_17 = arith.constant dense<0.000000e+00> : vector<2x8x8xf32>
    %35 = tpu.matmul %34, %21, %cst_17 {dimension_numbers = #tpu.dot_dimension_numbers<[2], [1], [1], [2], [0, 0, 0, 1, 1, 2], [0], [0]>} : vector<2x8x8xf32>, vector<2x8x8xf32>, vector<2x8x8xf32> -> vector<2x8x8xf32>
    "tpu.trace_stop"() : () -> ()
    %36 = vector.shape_cast %35 : vector<2x8x8xf32> to vector<16x8xf32>
    %37 = vector.extract_strided_slice %14 {offsets = [0, 0], sizes = [8, 32], strides = [1, 1]} : vector<32x32xf32> to vector<8x32xf32>
    %cst_18 = arith.constant dense<0.000000e+00> : vector<16x32xf32>
    %38 = tpu.matmul %36, %37, %cst_18 {dimension_numbers = #tpu.dot_dimension_numbers<[1], [0], [0], [1], [0, 0, 1, 1], [], []>} : vector<16x8xf32>, vector<8x32xf32>, vector<16x32xf32> -> vector<16x32xf32>
    %39 = arith.addf %15, %38 : vector<16x32xf32>
    %40 = vector.extract_strided_slice %12 {offsets = [0, 8], sizes = [16, 8], strides = [1, 1]} : vector<16x96xf32> to vector<16x8xf32>
    %41 = vector.shape_cast %40 : vector<16x8xf32> to vector<2x8x8xf32>
    %42 = vector.extract_strided_slice %12 {offsets = [0, 40], sizes = [16, 8], strides = [1, 1]} : vector<16x96xf32> to vector<16x8xf32>
    %43 = vector.shape_cast %42 : vector<16x8xf32> to vector<2x8x8xf32>
    %44 = vector.extract_strided_slice %12 {offsets = [0, 72], sizes = [16, 8], strides = [1, 1]} : vector<16x96xf32> to vector<16x8xf32>
    %45 = vector.shape_cast %44 : vector<16x8xf32> to vector<2x8x8xf32>
    "tpu.trace_start"() <{level = 10 : i32, message = "bqd,bkd->bqk"}> : () -> ()
    %cst_19 = arith.constant dense<0.000000e+00> : vector<2x8x8xf32>
    %46 = tpu.matmul %41, %43, %cst_19 {dimension_numbers = #tpu.dot_dimension_numbers<[2], [2], [1], [1], [0, 0, 0, 1, 1, 1], [0], [0]>} : vector<2x8x8xf32>, vector<2x8x8xf32>, vector<2x8x8xf32> -> vector<2x8x8xf32>
    "tpu.trace_stop"() : () -> ()
    %47 = vector.broadcast %5 : f32 to vector<2x8x8xf32>
    %48 = arith.mulf %46, %47 : vector<2x8x8xf32>
    %cst_20 = arith.constant dense<0xFF800000> : vector<2x8xf32>
    %49 = vector.multi_reduction <maximumf>, %48, %cst_20 [2] : vector<2x8x8xf32> to vector<2x8xf32>
    %50 = vector.shape_cast %49 : vector<2x8xf32> to vector<2x8x1xf32>
    %51 = vector.broadcast %50 : vector<2x8x1xf32> to vector<2x8x8xf32>
    %52 = arith.subf %48, %51 : vector<2x8x8xf32>
    %53 = math.exp %52 : vector<2x8x8xf32>
    %cst_21 = arith.constant dense<0.000000e+00> : vector<2x8xf32>
    %54 = vector.multi_reduction <add>, %53, %cst_21 [2] : vector<2x8x8xf32> to vector<2x8xf32>
    %55 = vector.shape_cast %54 : vector<2x8xf32> to vector<2x8x1xf32>
    %56 = tpu.reciprocal %55 : vector<2x8x1xf32> -> vector<2x8x1xf32>
    %57 = vector.broadcast %56 : vector<2x8x1xf32> to vector<2x8x8xf32>
    %58 = arith.mulf %53, %57 : vector<2x8x8xf32>
    "tpu.trace_start"() <{level = 10 : i32, message = "bqk,bkd->bqd"}> : () -> ()
    %cst_22 = arith.constant dense<0.000000e+00> : vector<2x8x8xf32>
    %59 = tpu.matmul %58, %45, %cst_22 {dimension_numbers = #tpu.dot_dimension_numbers<[2], [1], [1], [2], [0, 0, 0, 1, 1, 2], [0], [0]>} : vector<2x8x8xf32>, vector<2x8x8xf32>, vector<2x8x8xf32> -> vector<2x8x8xf32>
    "tpu.trace_stop"() : () -> ()
    %60 = vector.shape_cast %59 : vector<2x8x8xf32> to vector<16x8xf32>
    %61 = vector.extract_strided_slice %14 {offsets = [8, 0], sizes = [8, 32], strides = [1, 1]} : vector<32x32xf32> to vector<8x32xf32>
    %cst_23 = arith.constant dense<0.000000e+00> : vector<16x32xf32>
    %62 = tpu.matmul %60, %61, %cst_23 {dimension_numbers = #tpu.dot_dimension_numbers<[1], [0], [0], [1], [0, 0, 1, 1], [], []>} : vector<16x8xf32>, vector<8x32xf32>, vector<16x32xf32> -> vector<16x32xf32>
    %63 = arith.addf %39, %62 : vector<16x32xf32>
    %64 = vector.extract_strided_slice %12 {offsets = [0, 16], sizes = [16, 8], strides = [1, 1]} : vector<16x96xf32> to vector<16x8xf32>
    %65 = vector.shape_cast %64 : vector<16x8xf32> to vector<2x8x8xf32>
    %66 = vector.extract_strided_slice %12 {offsets = [0, 48], sizes = [16, 8], strides = [1, 1]} : vector<16x96xf32> to vector<16x8xf32>
    %67 = vector.shape_cast %66 : vector<16x8xf32> to vector<2x8x8xf32>
    %68 = vector.extract_strided_slice %12 {offsets = [0, 80], sizes = [16, 8], strides = [1, 1]} : vector<16x96xf32> to vector<16x8xf32>
    %69 = vector.shape_cast %68 : vector<16x8xf32> to vector<2x8x8xf32>
    "tpu.trace_start"() <{level = 10 : i32, message = "bqd,bkd->bqk"}> : () -> ()
    %cst_24 = arith.constant dense<0.000000e+00> : vector<2x8x8xf32>
    %70 = tpu.matmul %65, %67, %cst_24 {dimension_numbers = #tpu.dot_dimension_numbers<[2], [2], [1], [1], [0, 0, 0, 1, 1, 1], [0], [0]>} : vector<2x8x8xf32>, vector<2x8x8xf32>, vector<2x8x8xf32> -> vector<2x8x8xf32>
    "tpu.trace_stop"() : () -> ()
    %71 = vector.broadcast %5 : f32 to vector<2x8x8xf32>
    %72 = arith.mulf %70, %71 : vector<2x8x8xf32>
    %cst_25 = arith.constant dense<0xFF800000> : vector<2x8xf32>
    %73 = vector.multi_reduction <maximumf>, %72, %cst_25 [2] : vector<2x8x8xf32> to vector<2x8xf32>
    %74 = vector.shape_cast %73 : vector<2x8xf32> to vector<2x8x1xf32>
    %75 = vector.broadcast %74 : vector<2x8x1xf32> to vector<2x8x8xf32>
    %76 = arith.subf %72, %75 : vector<2x8x8xf32>
    %77 = math.exp %76 : vector<2x8x8xf32>
    %cst_26 = arith.constant dense<0.000000e+00> : vector<2x8xf32>
    %78 = vector.multi_reduction <add>, %77, %cst_26 [2] : vector<2x8x8xf32> to vector<2x8xf32>
    %79 = vector.shape_cast %78 : vector<2x8xf32> to vector<2x8x1xf32>
    %80 = tpu.reciprocal %79 : vector<2x8x1xf32> -> vector<2x8x1xf32>
    %81 = vector.broadcast %80 : vector<2x8x1xf32> to vector<2x8x8xf32>
    %82 = arith.mulf %77, %81 : vector<2x8x8xf32>
    "tpu.trace_start"() <{level = 10 : i32, message = "bqk,bkd->bqd"}> : () -> ()
    %cst_27 = arith.constant dense<0.000000e+00> : vector<2x8x8xf32>
    %83 = tpu.matmul %82, %69, %cst_27 {dimension_numbers = #tpu.dot_dimension_numbers<[2], [1], [1], [2], [0, 0, 0, 1, 1, 2], [0], [0]>} : vector<2x8x8xf32>, vector<2x8x8xf32>, vector<2x8x8xf32> -> vector<2x8x8xf32>
    "tpu.trace_stop"() : () -> ()
    %84 = vector.shape_cast %83 : vector<2x8x8xf32> to vector<16x8xf32>
    %85 = vector.extract_strided_slice %14 {offsets = [16, 0], sizes = [8, 32], strides = [1, 1]} : vector<32x32xf32> to vector<8x32xf32>
    %cst_28 = arith.constant dense<0.000000e+00> : vector<16x32xf32>
    %86 = tpu.matmul %84, %85, %cst_28 {dimension_numbers = #tpu.dot_dimension_numbers<[1], [0], [0], [1], [0, 0, 1, 1], [], []>} : vector<16x8xf32>, vector<8x32xf32>, vector<16x32xf32> -> vector<16x32xf32>
    %87 = arith.addf %63, %86 : vector<16x32xf32>
    %88 = vector.extract_strided_slice %12 {offsets = [0, 24], sizes = [16, 8], strides = [1, 1]} : vector<16x96xf32> to vector<16x8xf32>
    %89 = vector.shape_cast %88 : vector<16x8xf32> to vector<2x8x8xf32>
    %90 = vector.extract_strided_slice %12 {offsets = [0, 56], sizes = [16, 8], strides = [1, 1]} : vector<16x96xf32> to vector<16x8xf32>
    %91 = vector.shape_cast %90 : vector<16x8xf32> to vector<2x8x8xf32>
    %92 = vector.extract_strided_slice %12 {offsets = [0, 88], sizes = [16, 8], strides = [1, 1]} : vector<16x96xf32> to vector<16x8xf32>
    %93 = vector.shape_cast %92 : vector<16x8xf32> to vector<2x8x8xf32>
    "tpu.trace_start"() <{level = 10 : i32, message = "bqd,bkd->bqk"}> : () -> ()
    %cst_29 = arith.constant dense<0.000000e+00> : vector<2x8x8xf32>
    %94 = tpu.matmul %89, %91, %cst_29 {dimension_numbers = #tpu.dot_dimension_numbers<[2], [2], [1], [1], [0, 0, 0, 1, 1, 1], [0], [0]>} : vector<2x8x8xf32>, vector<2x8x8xf32>, vector<2x8x8xf32> -> vector<2x8x8xf32>
    "tpu.trace_stop"() : () -> ()
    %95 = vector.broadcast %5 : f32 to vector<2x8x8xf32>
    %96 = arith.mulf %94, %95 : vector<2x8x8xf32>
    %cst_30 = arith.constant dense<0xFF800000> : vector<2x8xf32>
    %97 = vector.multi_reduction <maximumf>, %96, %cst_30 [2] : vector<2x8x8xf32> to vector<2x8xf32>
    %98 = vector.shape_cast %97 : vector<2x8xf32> to vector<2x8x1xf32>
    %99 = vector.broadcast %98 : vector<2x8x1xf32> to vector<2x8x8xf32>
    %100 = arith.subf %96, %99 : vector<2x8x8xf32>
    %101 = math.exp %100 : vector<2x8x8xf32>
    %cst_31 = arith.constant dense<0.000000e+00> : vector<2x8xf32>
    %102 = vector.multi_reduction <add>, %101, %cst_31 [2] : vector<2x8x8xf32> to vector<2x8xf32>
    %103 = vector.shape_cast %102 : vector<2x8xf32> to vector<2x8x1xf32>
    %104 = tpu.reciprocal %103 : vector<2x8x1xf32> -> vector<2x8x1xf32>
    %105 = vector.broadcast %104 : vector<2x8x1xf32> to vector<2x8x8xf32>
    %106 = arith.mulf %101, %105 : vector<2x8x8xf32>
    "tpu.trace_start"() <{level = 10 : i32, message = "bqk,bkd->bqd"}> : () -> ()
    %cst_32 = arith.constant dense<0.000000e+00> : vector<2x8x8xf32>
    %107 = tpu.matmul %106, %93, %cst_32 {dimension_numbers = #tpu.dot_dimension_numbers<[2], [1], [1], [2], [0, 0, 0, 1, 1, 2], [0], [0]>} : vector<2x8x8xf32>, vector<2x8x8xf32>, vector<2x8x8xf32> -> vector<2x8x8xf32>
    "tpu.trace_stop"() : () -> ()
    %108 = vector.shape_cast %107 : vector<2x8x8xf32> to vector<16x8xf32>
    %109 = vector.extract_strided_slice %14 {offsets = [24, 0], sizes = [8, 32], strides = [1, 1]} : vector<32x32xf32> to vector<8x32xf32>
    %cst_33 = arith.constant dense<0.000000e+00> : vector<16x32xf32>
    %110 = tpu.matmul %108, %109, %cst_33 {dimension_numbers = #tpu.dot_dimension_numbers<[1], [0], [0], [1], [0, 0, 1, 1], [], []>} : vector<16x8xf32>, vector<8x32xf32>, vector<16x32xf32> -> vector<16x32xf32>
    %111 = arith.addf %87, %110 : vector<16x32xf32>
    %c0_34 = arith.constant 0 : index
    %c0_35 = arith.constant 0 : index
    %c0_36 = arith.constant 0 : index
    %112 = vector.load %arg7[%c0_34, %c0_35, %c0_36] : memref<1x1x32xf32, #tpu.memory_space<vmem>>, vector<1x1x32xf32>
    %113 = vector.shape_cast %112 : vector<1x1x32xf32> to vector<1x32xf32>
    %114 = vector.broadcast %113 : vector<1x32xf32> to vector<16x32xf32>
    %115 = arith.addf %111, %114 : vector<16x32xf32>
    %116 = arith.addf %3, %115 : vector<16x32xf32>
    %c0_37 = arith.constant 0 : index
    %c0_38 = arith.constant 0 : index
    %c0_39 = arith.constant 0 : index
    %117 = vector.load %arg8[%c0_37, %c0_38, %c0_39] : memref<1x1x32xf32, #tpu.memory_space<vmem>>, vector<1x1x32xf32>
    %118 = vector.shape_cast %117 : vector<1x1x32xf32> to vector<1x32xf32>
    %c0_40 = arith.constant 0 : index
    %c0_41 = arith.constant 0 : index
    %c0_42 = arith.constant 0 : index
    %119 = vector.load %arg9[%c0_40, %c0_41, %c0_42] : memref<1x1x32xf32, #tpu.memory_space<vmem>>, vector<1x1x32xf32>
    %120 = vector.shape_cast %119 : vector<1x1x32xf32> to vector<1x32xf32>
    %cst_43 = arith.constant dense<0.000000e+00> : vector<16xf32>
    %121 = vector.multi_reduction <add>, %116, %cst_43 [1] : vector<16x32xf32> to vector<16xf32>
    %122 = vector.shape_cast %121 : vector<16xf32> to vector<16x1xf32>
    %cst_44 = arith.constant 3.200000e+01 : f32
    %123 = vector.broadcast %cst_44 : f32 to vector<16x1xf32>
    %124 = arith.divf %122, %123 : vector<16x1xf32>
    %125 = vector.broadcast %124 : vector<16x1xf32> to vector<16x32xf32>
    %126 = arith.subf %116, %125 : vector<16x32xf32>
    %127 = arith.mulf %126, %126 : vector<16x32xf32>
    %cst_45 = arith.constant dense<0.000000e+00> : vector<16xf32>
    %128 = vector.multi_reduction <add>, %127, %cst_45 [1] : vector<16x32xf32> to vector<16xf32>
    %129 = vector.shape_cast %128 : vector<16xf32> to vector<16x1xf32>
    %cst_46 = arith.constant 3.200000e+01 : f32
    %130 = vector.broadcast %cst_46 : f32 to vector<16x1xf32>
    %131 = arith.divf %129, %130 : vector<16x1xf32>
    %132 = vector.broadcast %124 : vector<16x1xf32> to vector<16x32xf32>
    %133 = arith.subf %116, %132 : vector<16x32xf32>
    %cst_47 = arith.constant 9.99999996E-13 : f32
    %134 = vector.broadcast %cst_47 : f32 to vector<16x1xf32>
    %135 = arith.addf %131, %134 : vector<16x1xf32>
    %136 = math.rsqrt %135 : vector<16x1xf32>
    %137 = vector.broadcast %136 : vector<16x1xf32> to vector<16x32xf32>
    %138 = arith.mulf %133, %137 : vector<16x32xf32>
    %139 = vector.broadcast %118 : vector<1x32xf32> to vector<16x32xf32>
    %140 = arith.mulf %138, %139 : vector<16x32xf32>
    %141 = vector.broadcast %120 : vector<1x32xf32> to vector<16x32xf32>
    %142 = arith.addf %140, %141 : vector<16x32xf32>
    %c0_48 = arith.constant 0 : index
    %c0_49 = arith.constant 0 : index
    %c0_50 = arith.constant 0 : index
    %143 = vector.load %arg10[%c0_48, %c0_49, %c0_50] : memref<1x32x64xf32, #tpu.memory_space<vmem>>, vector<1x32x64xf32>
    %144 = vector.shape_cast %143 : vector<1x32x64xf32> to vector<32x64xf32>
    %cst_51 = arith.constant dense<0.000000e+00> : vector<16x64xf32>
    %145 = tpu.matmul %142, %144, %cst_51 {dimension_numbers = #tpu.dot_dimension_numbers<[1], [0], [0], [1], [0, 0, 1, 1], [], []>} : vector<16x32xf32>, vector<32x64xf32>, vector<16x64xf32> -> vector<16x64xf32>
    %c0_52 = arith.constant 0 : index
    %c0_53 = arith.constant 0 : index
    %c0_54 = arith.constant 0 : index
    %146 = vector.load %arg11[%c0_52, %c0_53, %c0_54] : memref<1x1x64xf32, #tpu.memory_space<vmem>>, vector<1x1x64xf32>
    %147 = vector.shape_cast %146 : vector<1x1x64xf32> to vector<1x64xf32>
    %148 = vector.broadcast %147 : vector<1x64xf32> to vector<16x64xf32>
    %149 = arith.addf %145, %148 : vector<16x64xf32>
    %cst_55 = arith.constant 5.000000e-01 : f32
    %150 = vector.broadcast %cst_55 : f32 to vector<16x64xf32>
    %151 = arith.mulf %150, %149 : vector<16x64xf32>
    %cst_56 = arith.constant 2.000000e+00 : f32
    %152 = math.sqrt %cst_56 : f32
    %153 = vector.broadcast %152 : f32 to vector<16x64xf32>
    %154 = arith.divf %149, %153 : vector<16x64xf32>
    %155 = math.erf %154 : vector<16x64xf32>
    %cst_57 = arith.constant 1.000000e+00 : f32
    %156 = vector.broadcast %cst_57 : f32 to vector<16x64xf32>
    %157 = arith.addf %156, %155 : vector<16x64xf32>
    %158 = arith.mulf %151, %157 : vector<16x64xf32>
    %c0_58 = arith.constant 0 : index
    %c0_59 = arith.constant 0 : index
    %c0_60 = arith.constant 0 : index
    %159 = vector.load %arg12[%c0_58, %c0_59, %c0_60] : memref<1x64x32xf32, #tpu.memory_space<vmem>>, vector<1x64x32xf32>
    %160 = vector.shape_cast %159 : vector<1x64x32xf32> to vector<64x32xf32>
    %cst_61 = arith.constant dense<0.000000e+00> : vector<16x32xf32>
    %161 = tpu.matmul %158, %160, %cst_61 {dimension_numbers = #tpu.dot_dimension_numbers<[1], [0], [0], [1], [0, 0, 1, 1], [], []>} : vector<16x64xf32>, vector<64x32xf32>, vector<16x32xf32> -> vector<16x32xf32>
    %c0_62 = arith.constant 0 : index
    %c0_63 = arith.constant 0 : index
    %c0_64 = arith.constant 0 : index
    %162 = vector.load %arg13[%c0_62, %c0_63, %c0_64] : memref<1x1x32xf32, #tpu.memory_space<vmem>>, vector<1x1x32xf32>
    %163 = vector.shape_cast %162 : vector<1x1x32xf32> to vector<1x32xf32>
    %164 = vector.broadcast %163 : vector<1x32xf32> to vector<16x32xf32>
    %165 = arith.addf %161, %164 : vector<16x32xf32>
    %166 = arith.addf %142, %165 : vector<16x32xf32>
    %c0_65 = arith.constant 0 : index
    %c0_66 = arith.constant 0 : index
    %c0_67 = arith.constant 0 : index
    %167 = vector.load %arg14[%c0_65, %c0_66, %c0_67] : memref<1x1x32xf32, #tpu.memory_space<vmem>>, vector<1x1x32xf32>
    %168 = vector.shape_cast %167 : vector<1x1x32xf32> to vector<1x32xf32>
    %c0_68 = arith.constant 0 : index
    %c0_69 = arith.constant 0 : index
    %c0_70 = arith.constant 0 : index
    %169 = vector.load %arg15[%c0_68, %c0_69, %c0_70] : memref<1x1x32xf32, #tpu.memory_space<vmem>>, vector<1x1x32xf32>
    %170 = vector.shape_cast %169 : vector<1x1x32xf32> to vector<1x32xf32>
    %cst_71 = arith.constant dense<0.000000e+00> : vector<16xf32>
    %171 = vector.multi_reduction <add>, %166, %cst_71 [1] : vector<16x32xf32> to vector<16xf32>
    %172 = vector.shape_cast %171 : vector<16xf32> to vector<16x1xf32>
    %cst_72 = arith.constant 3.200000e+01 : f32
    %173 = vector.broadcast %cst_72 : f32 to vector<16x1xf32>
    %174 = arith.divf %172, %173 : vector<16x1xf32>
    %175 = vector.broadcast %174 : vector<16x1xf32> to vector<16x32xf32>
    %176 = arith.subf %166, %175 : vector<16x32xf32>
    %177 = arith.mulf %176, %176 : vector<16x32xf32>
    %cst_73 = arith.constant dense<0.000000e+00> : vector<16xf32>
    %178 = vector.multi_reduction <add>, %177, %cst_73 [1] : vector<16x32xf32> to vector<16xf32>
    %179 = vector.shape_cast %178 : vector<16xf32> to vector<16x1xf32>
    %cst_74 = arith.constant 3.200000e+01 : f32
    %180 = vector.broadcast %cst_74 : f32 to vector<16x1xf32>
    %181 = arith.divf %179, %180 : vector<16x1xf32>
    %182 = vector.broadcast %174 : vector<16x1xf32> to vector<16x32xf32>
    %183 = arith.subf %166, %182 : vector<16x32xf32>
    %cst_75 = arith.constant 9.99999996E-13 : f32
    %184 = vector.broadcast %cst_75 : f32 to vector<16x1xf32>
    %185 = arith.addf %181, %184 : vector<16x1xf32>
    %186 = math.rsqrt %185 : vector<16x1xf32>
    %187 = vector.broadcast %186 : vector<16x1xf32> to vector<16x32xf32>
    %188 = arith.mulf %183, %187 : vector<16x32xf32>
    %189 = vector.broadcast %168 : vector<1x32xf32> to vector<16x32xf32>
    %190 = arith.mulf %188, %189 : vector<16x32xf32>
    %191 = vector.broadcast %170 : vector<1x32xf32> to vector<16x32xf32>
    %192 = arith.addf %190, %191 : vector<16x32xf32>
    %c0_76 = arith.constant 0 : index
    %c0_77 = arith.constant 0 : index
    %193 = vector.load %arg17[%c0_76, %c0_77] : memref<16x32xf32, #tpu.memory_space<vmem>>, vector<16x32xf32>
    tpu.vector_store %arg17[%c0_76, %c0_77], %192 {strides = array<i32>} : memref<16x32xf32, #tpu.memory_space<vmem>>, vector<16x32xf32>,
    %194 = vector.extract_strided_slice %192 {offsets = [0, 0], sizes = [1, 32], strides = [1, 1]} : vector<16x32xf32> to vector<1x32xf32>
    %195 = vector.extract_strided_slice %192 {offsets = [8, 0], sizes = [1, 32], strides = [1, 1]} : vector<16x32xf32> to vector<1x32xf32>
    %196 = tpu.concatenate %194, %195 in 0 : vector<1x32xf32>, vector<1x32xf32> -> vector<2x32xf32>
    %c0_78 = arith.constant 0 : index
    %c0_79 = arith.constant 0 : index
    %197 = vector.load %arg16[%c0_78, %c0_79] : memref<2x32xf32, #tpu.memory_space<vmem>>, vector<2x32xf32>
    tpu.vector_store %arg16[%c0_78, %c0_79], %196 {strides = array<i32>} : memref<2x32xf32, #tpu.memory_space<vmem>>, vector<2x32xf32>,
    return
  }
  func.func @transform_0(%arg0: i32) -> (i32, i32) {
    %c0_i32 = arith.constant 0 : i32
    %c0_i32_0 = arith.constant 0 : i32
    %c0_i32_1 = arith.constant 0 : i32
    return %c0_i32, %c0_i32_0 : i32, i32
  }
  func.func @transform_1(%arg0: i32) -> (i32, i32) {
    %c0_i32 = arith.constant 0 : i32
    %c0_i32_0 = arith.constant 0 : i32
    %c0_i32_1 = arith.constant 0 : i32
    return %c0_i32, %c0_i32_0 : i32, i32
  }
  func.func @transform_2(%arg0: i32) -> (i32, i32) {
    %c0_i32 = arith.constant 0 : i32
    %c0_i32_0 = arith.constant 0 : i32
    %c0_i32_1 = arith.constant 0 : i32
    return %c0_i32, %c0_i32_0 : i32, i32
  }
  func.func @transform_3(%arg0: i32) -> (i32, i32, i32) {
    %c0_i32 = arith.constant 0 : i32
    %c0_i32_0 = arith.constant 0 : i32
    %c0_i32_1 = arith.constant 0 : i32
    return %arg0, %c0_i32, %c0_i32_0 : i32, i32, i32
  }
  func.func @transform_4(%arg0: i32) -> (i32, i32, i32) {
    %c0_i32 = arith.constant 0 : i32
    %c0_i32_0 = arith.constant 0 : i32
    %c0_i32_1 = arith.constant 0 : i32
    return %arg0, %c0_i32, %c0_i32_0 : i32, i32, i32
  }
  func.func @transform_5(%arg0: i32) -> (i32, i32, i32) {
    %c0_i32 = arith.constant 0 : i32
    %c0_i32_0 = arith.constant 0 : i32
    %c0_i32_1 = arith.constant 0 : i32
    return %arg0, %c0_i32, %c0_i32_0 : i32, i32, i32
  }
  func.func @transform_6(%arg0: i32) -> (i32, i32, i32) {
    %c0_i32 = arith.constant 0 : i32
    %c0_i32_0 = arith.constant 0 : i32
    %c0_i32_1 = arith.constant 0 : i32
    return %arg0, %c0_i32, %c0_i32_0 : i32, i32, i32
  }
  func.func @transform_7(%arg0: i32) -> (i32, i32, i32) {
    %c0_i32 = arith.constant 0 : i32
    %c0_i32_0 = arith.constant 0 : i32
    %c0_i32_1 = arith.constant 0 : i32
    return %arg0, %c0_i32, %c0_i32_0 : i32, i32, i32
  }
  func.func @transform_8(%arg0: i32) -> (i32, i32, i32) {
    %c0_i32 = arith.constant 0 : i32
    %c0_i32_0 = arith.constant 0 : i32
    %c0_i32_1 = arith.constant 0 : i32
    return %arg0, %c0_i32, %c0_i32_0 : i32, i32, i32
  }
  func.func @transform_9(%arg0: i32) -> (i32, i32, i32) {
    %c0_i32 = arith.constant 0 : i32
    %c0_i32_0 = arith.constant 0 : i32
    %c0_i32_1 = arith.constant 0 : i32
    return %arg0, %c0_i32, %c0_i32_0 : i32, i32, i32
  }
  func.func @transform_10(%arg0: i32) -> (i32, i32, i32) {
    %c0_i32 = arith.constant 0 : i32
    %c0_i32_0 = arith.constant 0 : i32
    %c0_i32_1 = arith.constant 0 : i32
    return %arg0, %c0_i32, %c0_i32_0 : i32, i32, i32
  }
  func.func @transform_11(%arg0: i32) -> (i32, i32, i32) {
    %c0_i32 = arith.constant 0 : i32
    %c0_i32_0 = arith.constant 0 : i32
    %c0_i32_1 = arith.constant 0 : i32
    return %arg0, %c0_i32, %c0_i32_0 : i32, i32, i32
  }
  func.func @transform_12(%arg0: i32) -> (i32, i32, i32) {
    %c0_i32 = arith.constant 0 : i32
    %c0_i32_0 = arith.constant 0 : i32
    %c0_i32_1 = arith.constant 0 : i32
    return %arg0, %c0_i32, %c0_i32_0 : i32, i32, i32
  }
  func.func @transform_13(%arg0: i32) -> (i32, i32, i32) {
    %c0_i32 = arith.constant 0 : i32
    %c0_i32_0 = arith.constant 0 : i32
    %c0_i32_1 = arith.constant 0 : i32
    return %arg0, %c0_i32, %c0_i32_0 : i32, i32, i32
  }
  func.func @transform_14(%arg0: i32) -> (i32, i32, i32) {
    %c0_i32 = arith.constant 0 : i32
    %c0_i32_0 = arith.constant 0 : i32
    %c0_i32_1 = arith.constant 0 : i32
    return %arg0, %c0_i32, %c0_i32_0 : i32, i32, i32
  }
  func.func @transform_15(%arg0: i32) -> (i32, i32) {
    %c0_i32 = arith.constant 0 : i32
    %c0_i32_0 = arith.constant 0 : i32
    %c0_i32_1 = arith.constant 0 : i32
    return %c0_i32, %c0_i32_0 : i32, i32
  }
}

</mosaic_0001>

<bundles_post_ra>
// kernel: tpu_custom_call.1
= control target key start
LH: loop header
LB: loop body
LE: loop exit
PB: predicated region body
PF: predicated region fallthrough
CT: control target
= control target key end

     0   :  { %s3177_s0 = inlined_call_operand.hbm [shape: f32[16,32], index: 0, kind: input, shape index: {}]   ;;  %s3178_s1 = inlined_call_operand.hbm [shape: f32[1,32], index: 1, kind: input, shape index: {}]   ;;  %s3179_s2 = inlined_call_operand.hbm [shape: f32[1,32], index: 2, kind: input, shape index: {}]   ;;  %s3180_s3 = inlined_call_operand.vmem [shape: f32[2,32,96], index: 3, kind: input, shape index: {}]   ;;  %s3181_s4 = inlined_call_operand.vmem [shape: f32[2,1,96], index: 4, kind: input, shape index: {}]   ;;  %s3182_s5 = inlined_call_operand.vmem [shape: f32[2,32,32], index: 5, kind: input, shape index: {}]   ;;  %s3183_s6 = inlined_call_operand.vmem [shape: f32[2,1,32], index: 6, kind: input, shape index: {}]   ;;  %s3184_s7 = inlined_call_operand.hbm [shape: f32[2,1,32], index: 7, kind: input, shape index: {}]   ;;  %s3185_s8 = inlined_call_operand.hbm [shape: f32[2,1,32], index: 8, kind: input, shape index: {}]   ;;  %s3186_s9 = inlined_call_operand.vmem [shape: f32[2,32,64], index: 9, kind: input, shape index: {}]   ;;  %s3187_s10 = inlined_call_operand.vmem [shape: f32[2,1,64], index: 10, kind: input, shape index: {}]   ;;  %s3188_s11 = inlined_call_operand.vmem [shape: f32[2,64,32], index: 11, kind: input, shape index: {}]   ;;  %s3189_s12 = inlined_call_operand.vmem [shape: f32[2,1,32], index: 12, kind: input, shape index: {}]   ;;  %s3190_s13 = inlined_call_operand.vmem [shape: f32[2,1,32], index: 13, kind: input, shape index: {}]   ;;  %s3191_s14 = inlined_call_operand.hbm [shape: f32[2,1,32], index: 14, kind: input, shape index: {}]   ;;  %s3192_s15 = inlined_call_operand.hbm [shape: f32[2,32], index: 15, kind: output, shape index: {}]  }
   0x1   :  { %3196 = sst [smem:[#allocation23_spill]] %s3177_s0 }
   0x2   :  { %3197 = sst [smem:[#allocation24_spill]] %s3178_s1 }
   0x3   :  { %3198 = sst [smem:[#allocation25_spill]] %s3179_s2 }
   0x4   :  { %3199 = sst [smem:[#allocation26_spill]] %s3180_s3 }
   0x5   :  { %3200 = sst [smem:[#allocation27_spill]] %s3182_s5 }
   0x6   :  { %3201 = sst [smem:[#allocation28_spill]] %s3184_s7 }
   0x7   :  { %3202 = sst [smem:[#allocation29_spill]] %s3186_s9 }
   0x8   :  { %3203 = sst [smem:[#allocation30_spill]] %s3187_s10 }
   0x9   :  { %3204 = sst [smem:[#allocation31_spill]] %s3188_s11 }
   0xa   :  { %3205 = sst [smem:[#allocation32_spill]] %s3189_s12 }
   0xb   :  { %3206 = sst [smem:[#allocation33_spill]] %s3190_s13 }
   0xc   :  { %3207 = sst [smem:[#allocation34_spill]] %s3192_s15 }
   0xd   :  { %20 = vsyncpa [#allocation4], 0 }
   0xe   :  { %21 = vsyncpa [#allocation7], 0 }
   0xf   :  { %22 = vsyncpa [#allocation10], 0 }
  0x10   :  { %24 = vsyncpa [#allocation10 + $0x1], 0 }
  0x11   :  { %25 = vsyncpa [#allocation13], 0 }
  0x12   :  { %27 = vsyncpa [#allocation13 + $0x1], 0 }
  0x13   :  { %28 = vsyncpa [#allocation5], 0  ;;  %s2746_s18 = smov 0   ;;  %s2748_s19 = smov 0  }
  0x14   :  { %s2750_s20 = smov 0   ;;  %s2752_s21 = smov 0  }
  0x15 LB: > { %3208 = sst [smem:[#allocation20_spill]] %s2640_s20  ;;  %s2765_s22 = sadd.s32 4294967295, %s2644_s21   ;;  %s2644_s21 = sphi %s2752_s21, %s3235_s21   ;;  %s2640_s20 = sphi %s2750_s20, %s3237_s20   ;;  %s2636_s19 = sphi %s2748_s19, %s3239_s19   ;;  %s2632_s18 = sphi %s2746_s18, %s3238_s18  }
  0x16   : > { %p221_p0 = scmp.ne.s32.totalorder %s2636_s19, %s2632_s18  ;;  %p222_p1 = scmp.eq.s32.totalorder %s2765_s22, 0 }
  0x17   : > { %p2153_p2 = scmp.ge.s32.totalorder %s2644_s21, 1  ;;  %p435_p3 = scmp.lt.s32.totalorder %s2644_s21, 3 }
  0x18   : > { %p2154_p4 = scmp.ne.s32.totalorder %s2765_s22, 0  ;;  %p2774_p5 = por %p222_p1, %p221_p0 }
  0x19   : > { %s3210_s1 = sld [smem:[#allocation24_spill]]  ;;  %p2781_p6 = pnand %p2153_p2, %p435_p3 }
  0x1a   : > { %s2646_s28 = smov [#allocation6]   ;;  %s2794_s16 = sadd.s32 1, %s2644_s21  }
  0x1b   : > { %p2241_p7 = pneg %p2781_p6  ;;  %s463_s29 = sshll.u32 %s2646_s28, 4  ;;  %s464_s29 = int_to_ptr.vmem [resolvable:$true] %s463_s29 }
  0x1c   : > { %3213 = sst [smem:[#allocation21_spill]] %s2794_s16  ;;  %s208_s17 = sadd.s32 1, %s2640_s20 }
  0x1d   : > { %p2789_p8 = pnand %p2241_p7, %p222_p1  ;;  %s205_s18 = ssub.s32 %s2644_s21, %s2794_s16 }
  0x1e   : > { %p206_p9 = scmp.eq.s32.totalorder %s205_s18, 0  ;;  %p215_p10 = scmp.ne.s32.totalorder %s2640_s20, %s2636_s19 }
  0x1f   : > { %s461_s26 = sshll.u32 %s3210_s1, 4  ;;  %p216_p11 = scmp.eq.s32.totalorder %s2644_s21, 0  ;;  %s462_s26 = int_to_ptr.hbm [resolvable:$true] %s461_s26 }
  0x20   : > { %2247 = dma.hbm_to_vmem [thread:$0]  (!%p2789_p8), %s462_s26, 16, %s464_s29, [#allocation7]  }
  0x21   : > { %p2264_p12 = scmp.lt.s32.totalorder %s2644_s21, 2  ;;  %p217_p13 = por %p216_p11, %p215_p10 }
  0x22   : > { %s2806_s24 = scalar_select %p206_p9, %s2640_s20, %s208_s17  }
  0x23   : > { %s514_s25 = sand.u32 1, %s2644_s21   ;;  %s2810_s28 = sand.u32 1, %s2640_s20  }
  0x24   : > { %3214 = sst [smem:[#allocation22_spill]] %s2806_s24  ;;  %s517_s11 = scalar_lea.vmem [#allocation9], %s2810_s28 }
  0x25   : > { %s3215_s7 = sld [smem:[#allocation28_spill]]  ;;  %s524_s16 = sshll.u32 %s517_s11, 4  ;;  %s525_s16 = int_to_ptr.vmem [resolvable:$true] %s524_s16 }
  0x26   : > { %p2817_p0 = pnand %p2264_p12, %p217_p13  ;;  %s3217_s0 = sld [smem:[#allocation23_spill]] }
  0x27   : > { %s2647_s24 = smov [#allocation3]   ;;  %s2824_s15 = scalar_lea.sflag [#allocation10], %s514_s25 }
  0x28   : > { %s448_s1 = sshll.u32 %s2647_s24, 4  ;;  %p2420_p3 = pneg %p2817_p0  ;;  %s449_s1 = int_to_ptr.vmem [resolvable:$true] %s448_s1 }
  0x2b   : > { %s520_s13 = scalar_lea.hbm %s3215_s7, %s2644_s21  ;;  %s2423_s17 = scalar_lea.hbm %s3215_s7, 2 }
  0x2c   : > { %s522_s12 = sshll.u32 %s520_s13, 4  ;;  %s446_s18 = sshll.u32 %s3217_s0, 4  ;;  %s523_s12 = int_to_ptr.hbm [resolvable:$true] %s522_s12  ;;  %s447_s18 = int_to_ptr.hbm [resolvable:$true] %s446_s18 }
  0x2d   : > { %s2416_s13 = sshra.s32 %s523_s12, 4  ;;  %s2417_s13 = int_to_ptr.hbm [resolvable:$true] %s2416_s13 }
  0x2e   : > { %s2418_s11 = scalar_lea.hbm %s2417_s13, 1  ;;  %p2424_p10 = scmp.lt.s32.totalorder %s2417_s13, %s3215_s7 }
  0x2f   : > { %p2419_p2 = scmp.ne.s32.totalorder %s2417_s13, %s2418_s11  ;;  %p2425_p11 = scmp.lt.s32.totalorder %s2423_s17, %s2418_s11 }
  0x31   : > { %p2421_p7 = pnand %p2420_p3, %p2419_p2  ;;  %p2426_p12 = por %p2425_p11, %p2424_p10 }
  0x33   : > { %p2422_p9 = pneg %p2421_p7 }
  0x35   : > { %p2427_p13 = pnand %p2426_p12, %p2422_p9 }
  0x37   : > { %2430 = shalt.err (!%p2427_p13)
}
  0x38   : > { %2254 = dma.hbm_to_vmem [thread:$0]  (!%p2817_p0), %s523_s12, 16, %s525_s16, %s2824_s15  }
  0x39   : > { %s3218_s2 = sld [smem:[#allocation25_spill]]  ;;  %s2648_s29 = smov 128  }
  0x3a   : > { %s2649_s0 = smov 8   ;;  %s2650_s10 = smov [#allocation8]  }
  0x3b   : > { %2244 = dma.hbm_to_vmem [thread:$0]  (!%p2789_p8), %s447_s18, 256, %s449_s1, [#allocation4], %s2648_s29, %s2648_s29, %s2649_s0  }
  0x3c   : > { %s475_s13 = sshll.u32 %s2650_s10, 4  ;;  %s537_s7 = scalar_lea.hbm %s3185_s8, %s2644_s21  ;;  %s476_s13 = int_to_ptr.vmem [resolvable:$true] %s475_s13 }
  0x3d   : > { %s539_s12 = sshll.u32 %s537_s7, 4  ;;  %s534_s16 = scalar_lea.vmem [#allocation11], %s2810_s28  ;;  %s540_s12 = int_to_ptr.hbm [resolvable:$true] %s539_s12 }
  0x3e   : > { %s541_s9 = sshll.u32 %s534_s16, 4  ;;  %s2506_s24 = sshra.s32 %s540_s12, 4  ;;  %s542_s9 = int_to_ptr.vmem [resolvable:$true] %s541_s9  ;;  %s2507_s24 = int_to_ptr.hbm [resolvable:$true] %s2506_s24 }
  0x3f   : > { %s473_s25 = sshll.u32 %s3218_s2, 4  ;;  %s2508_s20 = scalar_lea.hbm %s2507_s24, 1  ;;  %s474_s25 = int_to_ptr.hbm [resolvable:$true] %s473_s25 }
  0x40   : > { %2250 = dma.hbm_to_vmem [thread:$0]  (!%p2789_p8), %s474_s25, 16, %s476_s13, [#allocation7]  }
  0x41   : > { %p2509_p2 = scmp.ne.s32.totalorder %s2507_s24, %s2508_s20  ;;  %s2513_s29 = scalar_lea.hbm %s3185_s8, 2 }
  0x42   : > { %p2514_p8 = scmp.lt.s32.totalorder %s2507_s24, %s3185_s8  ;;  %p2515_p10 = scmp.lt.s32.totalorder %s2513_s29, %s2508_s20 }
  0x43   : > { %p2511_p7 = pnand %p2509_p2, %p2420_p3 }
  0x44   : > { %p2516_p11 = por %p2515_p10, %p2514_p8 }
  0x45   : > { %p2512_p9 = pneg %p2511_p7 }
  0x47   : > { %p2517_p12 = pnand %p2516_p11, %p2512_p9 }
  0x49   : > { %2520 = shalt.err (!%p2517_p12)
}
  0x4a   : > { %2257 = dma.hbm_to_vmem [thread:$0]  (!%p2817_p0), %s540_s12, 16, %s542_s9, %s2824_s15  }
  0x4b   : > { %s588_s10 = scalar_lea.hbm %s3191_s14, %s2644_s21  ;;  %s585_s13 = scalar_lea.vmem [#allocation12], %s2810_s28 }
  0x4c   : > { %s592_s11 = sshll.u32 %s585_s13, 4  ;;  %s590_s17 = sshll.u32 %s588_s10, 4  ;;  %s593_s11 = int_to_ptr.vmem [resolvable:$true] %s592_s11  ;;  %s591_s17 = int_to_ptr.hbm [resolvable:$true] %s590_s17 }
  0x4d   : > { %s583_s16 = scalar_lea.sflag [#allocation13], %s2810_s28  ;;  %s2536_s24 = sshra.s32 %s591_s17, 4  ;;  %s2537_s24 = int_to_ptr.hbm [resolvable:$true] %s2536_s24 }
  0x4e   : > { %s2538_s20 = scalar_lea.hbm %s2537_s24, 1  ;;  %s2543_s15 = scalar_lea.hbm %s3191_s14, 2 }
  0x4f   : > { %p2539_p13 = scmp.ne.s32.totalorder %s2537_s24, %s2538_s20  ;;  %p2544_p9 = scmp.lt.s32.totalorder %s2537_s24, %s3191_s14 }
  0x50   : > { %p2545_p8 = scmp.lt.s32.totalorder %s2543_s15, %s2538_s20 }
  0x51   : > { %p2541_p2 = pnand %p2539_p13, %p2420_p3 }
  0x52   : > { %p2546_p10 = por %p2545_p8, %p2544_p9 }
  0x53   : > { %p2542_p7 = pneg %p2541_p2 }
  0x55   : > { %p2547_p11 = pnand %p2546_p10, %p2542_p7 }
  0x57   : > { %2550 = shalt.err (!%p2547_p11)
}
  0x58   : > { %2260 = dma.hbm_to_vmem [thread:$0]  (!%p2817_p0), %s591_s17, 16, %s593_s11, %s583_s16  }
  0x59   : > { %601 = sbr.rel (%p2781_p6) target bundleno = 3061 (0xbf5), region = 80 }
  0x5e   : > { %2611 = dma.done.wait (%p222_p1), [#allocation4], 256  }
  0x5f   : > { %2613 = vsyncadd (%p222_p1), [#allocation4], 4294967040 }
  0x60   : > { %2615 = dma.done.wait (%p222_p1), [#allocation7], 32  }
  0x61   : > { %2617 = vsyncadd (%p222_p1), [#allocation7], 4294967264  ;;  %s618_s28 = sand.u32 1, %s2765_s22   ;;  %s2893_s26 = sand.u32 1, %s2636_s19  }
  0x62   : > { %s619_s27 = scalar_lea.sflag [#allocation10], %s618_s28 }
  0x63   : > { %2619 = dma.done.wait (%p2774_p5), %s619_s27, 32  }
  0x64   : > { %2621 = vsyncadd (%p2774_p5), %s619_s27, 4294967264  ;;  %s637_s0 = scalar_lea.sflag [#allocation13], %s2893_s26 }
  0x65   : > { %2623 = dma.done.wait (%p2774_p5), %s637_s0, 16  }
  0x66   : > { %2625 = vsyncadd (%p2774_p5), %s637_s0, 4294967280  ;;  %p724_p1 = scmp.lt.s32.totalorder %s2765_s22, 1  ;;  %s3219_s3 = sld [smem:[#allocation26_spill]] }
  0x67   : > { %s3220_s5 = sld [smem:[#allocation27_spill]] }
  0x68   : > { %s2909_s7 = scalar_select %p724_p1, %s2765_s22, 1 }
  0x69   : > { %s3221_s27 = sld [smem:[#allocation29_spill]] }
  0x6a   : > { %s2215_s25 = sshll.u32 %s2909_s7, 5  ;;  %s3222_s30 = sld [smem:[#allocation30_spill]] }
  0x6b   : > { %s2218_s23 = sshll.u32 %s2909_s7, 6  ;;  %s3223_s11 = sld [smem:[#allocation31_spill]] }
  0x6c   : > { %s2919_s16 = scalar_lea.vmem %s3219_s3, %s2215_s25  ;;  %s3224_s3 = sld [smem:[#allocation32_spill]] }
  0x6d   : > { %s2924_s18 = scalar_lea.vmem %s3220_s5, %s2215_s25  ;;  %s3225_s5 = sld [smem:[#allocation33_spill]] }
  0x6f   : > { %s2933_s0 = scalar_lea.vmem %s3221_s27, %s2215_s25  ;;  %762 = sbr.rel (%p2154_p4) target bundleno = 394 (0x18a), region = 108 }
  0x70   : > { %s747_s17 = scalar_lea.vmem %s3222_s30, %s2909_s7 }
  0x71   : > { %s2943_s24 = scalar_lea.vmem %s3223_s11, %s2218_s23 }
  0x72   : > { %s755_s9 = scalar_lea.vmem %s3224_s3, %s2909_s7 }
  0x73   : > { %s758_s21 = scalar_lea.vmem %s3225_s5, %s2909_s7 }
  0x74   : > { %v763_v0 = vld [vmem:[#allocation3] sm:$0xff]  ;;  %vm767_vm0 = vcmask 261120   ;;  %v764_v2 = vld [vmem:[#allocation3 + $0x8] sm:$0xff]  ;;  %v2651_v4 = vmov 32.0   ;;  %v2322_v35 = vld [vmem:[#allocation6] ss:$0 sm:$0xff] }
  0x75   : > { %v768_v1 = vsel %vm767_vm0, %v763_v0, 0.0  ;;  %v771_v3 = vsel %vm767_vm0, %v764_v2, 0.0  ;;  %2324 = vrcp.f32 %v2651_v4  ;;  %v2323_v38 = vld [vmem:[#allocation8] ss:$0 sm:$0xff] }
  0x76   : > { %769 = vadd.xlane.f32.xlu0 %v768_v1 }
  0x7b   : > { %v2325_v5 = vpop.eup %2324 }
  0x7c   : > { %v775_v6 = vmul.f32 32.0, %v2325_v5  ;;  %vm779_vm1 = vweird.f32 %v2325_v5 }
  0x7e   : > { %772 = vadd.xlane.f32.xlu0 %v771_v3  ;;  %v776_v7 = vsub.f32 1.0, %v775_v6 }
  0x80   : > { %v777_v8 = vmul.f32 %v2325_v5, %v776_v7 }
  0x82   : > { %v778_v9 = vadd.f32 %v2325_v5, %v777_v8 }
  0x84   : > { %v780_v10 = vsel %vm779_vm1, %v2325_v5, %v778_v9 }
  0xe9   : > { %v770_v11 = vpop.xlane.xlu0 %769 }
  0xea   : > { %v781_v12 = vmul.f32 %v780_v10, %v770_v11 }
  0xec   : > { %v783_v13 = vsub.f32 %v763_v0, %v781_v12 }
  0xee   : > { %v785_v14 = vmul.f32 %v783_v13, %v783_v13 }
  0xf0   : > { %v787_v15 = vsel %vm767_vm0, %v785_v14, 0.0 }
  0xf1   : > { %788 = vadd.xlane.f32.xlu1 %v787_v15  ;;  %v773_v16 = vpop.xlane.xlu0 %772 }
  0xf2   : > { %v782_v17 = vmul.f32 %v780_v10, %v773_v16 }
  0xf4   : > { %v784_v18 = vsub.f32 %v764_v2, %v782_v17 }
  0xf6   : > { %v786_v19 = vmul.f32 %v784_v18, %v784_v18 }
  0xf8   : > { %v790_v20 = vsel %vm767_vm0, %v786_v19, 0.0 }
  0xf9   : > { %791 = vadd.xlane.f32.xlu1 %v790_v20 }
 0x164   : > { %v789_v21 = vpop.xlane.xlu1 %788 }
 0x165   : > { %v793_v22 = vmul.f32 %v789_v21, %v780_v10 }
 0x167   : > { %v795_v23 = vadd.f32 1e-12, %v793_v22 }
 0x169   : > { %2326 = vrsqrt.f32 %v795_v23  ;;  %vm803_vm3 = vweird.f32 %v795_v23 }
 0x16c   : > { %v792_v24 = vpop.xlane.xlu1 %791 }
 0x16d   : > { %v794_v25 = vmul.f32 %v792_v24, %v780_v10 }
 0x16f   : > { %v2327_v26 = vpop.eup %2326  ;;  %v796_v27 = vadd.f32 1e-12, %v794_v25 }
 0x170   : > { %v798_v28 = vmul.f32 %v2327_v26, %v795_v23  ;;  %vm804_vm2 = vweird.f32 %v2327_v26 }
 0x171   : > { %2328 = vrsqrt.f32 %v796_v27  ;;  %vm805_vm4 = vmor %vm803_vm3, %vm804_vm2  ;;  %vm813_vm6 = vweird.f32 %v796_v27 }
 0x172   : > { %v799_v29 = vmul.f32 %v2327_v26, %v798_v28 }
 0x174   : > { %v800_v30 = vmul.f32 0.5, %v799_v29 }
 0x176   : > { %v801_v31 = vsub.f32 1.5, %v800_v30 }
 0x177   : > { %v2329_v32 = vpop.eup %2328 }
 0x178   : > { %v802_v33 = vmul.f32 %v2327_v26, %v801_v31  ;;  %v808_v34 = vmul.f32 %v2329_v32, %v796_v27  ;;  %vm814_vm5 = vweird.f32 %v2329_v32 }
 0x179   : > { %vm815_vm7 = vmor %vm813_vm6, %vm814_vm5 }
 0x17a   : > { %v806_v36 = vsel %vm805_vm4, %v2327_v26, %v802_v33  ;;  %v809_v37 = vmul.f32 %v2329_v32, %v808_v34 }
 0x17b   : > { %v817_v39 = vmul.f32 %v806_v36, %v783_v13 }
 0x17c   : > { %v810_v40 = vmul.f32 0.5, %v809_v37 }
 0x17d   : > { %v822_v41 = vmul.f32 %v2322_v35, %v817_v39 }
 0x17e   : > { %v811_v42 = vsub.f32 1.5, %v810_v40 }
 0x17f   : > { %v827_v43 = vadd.f32 %v2323_v38, %v822_v41 }
 0x180   : > { %v812_v44 = vmul.f32 %v2329_v32, %v811_v42 }
 0x181   : > { %829 = vst.msk [vmem:[#allocation2] sm:$0xff] %vm767_vm0, %v827_v43 }
 0x182   : > { %v816_v45 = vsel %vm815_vm7, %v2329_v32, %v812_v44 }
 0x183   : > { %v818_v46 = vmul.f32 %v816_v45, %v784_v18 }
 0x185   : > { %v823_v47 = vmul.f32 %v2322_v35, %v818_v46 }
 0x187   : > { %v828_v48 = vadd.f32 %v2323_v38, %v823_v47 }
 0x189   : > { %830 = vst.msk [vmem:[#allocation2 + $0x8] sm:$0xff] %vm767_vm0, %v828_v48 }
 0x18a PF: > { %v836_v49 = vld [vmem:[%s2919_s16 + $0x18] sm:$0xff]  ;;  %v835_v50 = vld [vmem:[%s2919_s16 + $0x10] sm:$0xff]  ;;  %v834_v51 = vld [vmem:[%s2919_s16 + $0x8] sm:$0xff]  ;;  %vm841_vm8 = vcmask 261120   ;;  %s3226_s5 = scalar_lea.vmem %s3181_s4, %s2909_s7  ;;  %s2652_s1 = smov 88   ;;  %vm878_vm9 = vcmask 64512  }
 0x18b   : > { %860 = vmatpush.msra.mxu0 %v836_v49  ;;  %v833_v52 = vld [vmem:[%s2919_s16] sm:$0xff]  ;;  %s2653_s29 = smov 96   ;;  %s2654_s30 = smov 120  }
 0x18c   : > { %v2965_v53 = vld [vmem:[#allocation2] sm:$0xff]  ;;  %s2655_s25 = smov 64   ;;  %s2656_s11 = smov 112  }
 0x18d   : > { %861 = vmatpush.msra.mxu0 %v835_v50  ;;  %v2330_v55 = vld [vmem:[%s3226_s5] ss:$0 sm:$0xff]  ;;  %s2657_s16 = smov 56   ;;  %s2658_s12 = smov 80  }
 0x18e   : > { %s2659_s28 = smov 72   ;;  %s2660_s27 = smov 104  }
 0x18f   : > { %862 = vmatpush.msra.mxu0 %v834_v51  ;;  %s2661_s10 = smov 48   ;;  %s2662_s13 = smov 40  }
 0x190   : > { %v2969_v54 = vld [vmem:[#allocation2 + $0x8] sm:$0xff]  ;;  %s3228_s15 = scalar_lea.vmem [#allocation9], %s2893_s26  ;;  %p2268_p4 = scmp.eq.s32.totalorder %s2765_s22, 1 }
 0x191   : > { %863 = vmatpush.msra.mxu0 %v833_v52 }
 0x192   : > { %2171 = vmatmul.msk.f32.vlgmr.msra.gmra.mxu0 %vm841_vm8, %v2965_v53 }
 0x19a   : > { %2172 = vmatmul.msk.f32.gmra.mxu0 %vm841_vm8, %v2969_v54 }
 0x20f   : > { %v865_v56 = vpop.f32.mrf.mxu0 }
 0x210   : > { %v2978_v57 = vadd.f32 %v2330_v55, %v865_v56 }
 0x212   : > { %1034 = vrot.lane.b32.xlu1 %v2978_v57, %s2652_s1  ;;  %876 = vrot.lane.b32.xlu0 %v2978_v57, %s2653_s29 }
 0x217   : > { %v868_v58 = vpop.f32.mrf.mxu0 }
 0x218   : > { %v2983_v59 = vadd.f32 %v2330_v55, %v868_v58 }
 0x21a   : > { %1032 = vrot.lane.b32.xlu1 %v2978_v57, %s2654_s30  ;;  %904 = vrot.lane.b32.xlu0 %v2983_v59, %s2653_s29 }
 0x284   : > { %v1035_v60 = vpop.permute.xlu1 %1034  ;;  %v877_v61 = vpop.permute.xlu0 %876 }
 0x285   : > { %2173 = vmatpush.xpose.msk.msrb.mxu0 %vm878_vm9, %v877_v61  ;;  %2179 = vmatpush.xpose.msk.msra.mxu1 %vm878_vm9, %v1035_v60 }
 0x288   : > { %2174 = vmatmul.msk.f32.vlgmr.msrb.gmra.mxu0 %vm878_vm9, %v2978_v57 }
 0x28c   : > { %v1033_v62 = vpop.permute.xlu1 %1032  ;;  %v905_v63 = vpop.permute.xlu0 %904 }
 0x28d   : > { %2175 = vmatpush.xpose.msk.msra.mxu2 %vm878_vm9, %v905_v63  ;;  %2180 = vmatmul.msk.f32.vlgmr.msra.gmra.mxu1 %vm878_vm9, %v1033_v62 }
 0x290   : > { %2176 = vmatmul.msk.f32.vlgmr.msra.gmra.mxu2 %vm878_vm9, %v2983_v59 }
 0x305   : > { %v900_v0 = vpop.f32.mrf.mxu0 }
 0x306   : > { %v930_v1 = vmul.f32 0.35355338, %v900_v0 }
 0x308   : > { %v932_v2 = vsel %vm878_vm9, %v930_v1, -inf }
 0x309   : > { %933 = vmax.xlane.f32.xlu2 %v932_v2 }
 0x30a   : > { %v1057_v3 = vpop.f32.mrf.mxu1 }
 0x30b   : > { %v1088_v4 = vmul.f32 0.35355338, %v1057_v3 }
 0x30d   : > { %v1090_v5 = vsel %vm878_vm9, %v1088_v4, -inf }
 0x30e   : > { %1091 = vmax.xlane.f32.xlu0 %v1090_v5 }
 0x313   : > { %v927_v6 = vpop.f32.mrf.mxu2 }
 0x314   : > { %v931_v7 = vmul.f32 0.35355338, %v927_v6 }
 0x316   : > { %v935_v8 = vsel %vm878_vm9, %v931_v7, -inf }
 0x321   : > { %980 = vrot.lane.b32.xlu2 %v2978_v57, %s2655_s25 }
 0x322   : > { %1062 = vrot.lane.b32.xlu0 %v2983_v59, %s2652_s1 }
 0x329   : > { %1006 = vrot.lane.b32.xlu2 %v2983_v59, %s2655_s25  ;;  %s3233_s25 = scalar_lea.vmem [#allocation12], %s2893_s26 }
 0x32a   : > { %1248 = vrot.lane.b32.xlu0 %v2978_v57, %s2656_s11 }
 0x352   : > { %936 = vmax.xlane.f32.xlu2 %v935_v8 }
 0x36a   : > { %1138 = vrot.lane.b32.xlu2 %v2978_v57, %s2657_s16 }
 0x37c   : > { %v934_v9 = vpop.xlane.xlu2 %933 }
 0x37d   : > { %v938_v10 = vsub.f32 %v930_v1, %v934_v9 }
 0x37f   : > { %v940_v11 = vmul.f32 1.442695, %v938_v10 }
 0x381   : > { %2338 = vpow2.f32 %v940_v11  ;;  %v1092_v12 = vpop.xlane.xlu0 %1091 }
 0x382   : > { %v1096_v13 = vsub.f32 %v1088_v4, %v1092_v12  ;;  %v872_v12 = vld [vmem:[%s2924_s18 + $0x8] sm:$0xff] }
 0x384   : > { %v981_v14 = vpop.permute.xlu2 %980  ;;  %v1098_v15 = vmul.f32 1.442695, %v1096_v13 }
 0x385   : > { %1001 = vmatpush.msra.mxu3 %v981_v14 }
 0x386   : > { %2340 = vpow2.f32 %v1098_v15 }
 0x387   : > { %v2339_v16 = vpop.eup %2338 }
 0x388   : > { %v944_v17 = vsel %vm878_vm9, %v2339_v16, 0.0 }
 0x389   : > { %945 = vadd.xlane.f32.xlu1 %v944_v17 }
 0x38c   : > { %v1007_v18 = vpop.permute.xlu2 %1006  ;;  %v3008_v19 = vpop.eup %2340 }
 0x38d   : > { %1027 = vmatpush.msrb.mxu3 %v1007_v18  ;;  %v1102_v20 = vsel %vm878_vm9, %v3008_v19, 0.0 }
 0x393   : > { %1103 = vadd.xlane.f32.xlu2 %v1102_v20 }
 0x394   : > { %v1063_v21 = vpop.permute.xlu0 %1062 }
 0x395   : > { %2181 = vmatpush.xpose.msk.msrb.mxu2 %vm878_vm9, %v1063_v21 }
 0x399   : > { %1211 = vmatpush.msra.mxu2 %v872_v12 }
 0x39c   : > { %v1249_v6 = vpop.permute.xlu0 %1248 }
 0x3a2   : > { %1060 = vrot.lane.b32.xlu1 %v2983_v59, %s2654_s30 }
 0x3c5   : > { %v937_v22 = vpop.xlane.xlu2 %936 }
 0x3c6   : > { %v939_v23 = vsub.f32 %v931_v7, %v937_v22  ;;  %v871_v7 = vld [vmem:[%s2924_s18] sm:$0xff] }
 0x3c7   : > { %1240 = vmatpush.msra.mxu0 %v871_v7 }
 0x3c8   : > { %v942_v24 = vmul.f32 1.442695, %v939_v23 }
 0x3ca   : > { %2342 = vpow2.f32 %v942_v24 }
 0x3cd   : > { %v1139_v39 = vpop.permute.xlu2 %1138 }
 0x3d0   : > { %v2343_v25 = vpop.eup %2342 }
 0x3d1   : > { %v947_v26 = vsel %vm878_vm9, %v2343_v25, 0.0 }
 0x3d2   : > { %948 = vadd.xlane.f32.xlu2 %v947_v26 }
 0x3ea   : > { %1250 = vrot.lane.b32.xlu2 %v2978_v57, %s2658_s12 }
 0x3fc   : > { %v946_v27 = vpop.xlane.xlu1 %945 }
 0x3fd   : > { %2344 = vrcp.f32 %v946_v27  ;;  %v961_v31 = vand.u32 2147483648, %v946_v27  ;;  %v959_v33 = vand.u32 2147483647, %v946_v27  ;;  %vm955_vm11 = vweird.f32 %v946_v27 }
 0x3ff   : > { %v962_v35 = vor.u32 1.1754944e-38, %v961_v31  ;;  %vm960_vm13 = vcmp.eq.f32.partialorder %v959_v33, 8.507059e+37 }
 0x403   : > { %v2345_v28 = vpop.eup %2344 }
 0x404   : > { %v951_v29 = vmul.f32 %v2345_v28, %v946_v27  ;;  %vm956_vm10 = vweird.f32 %v2345_v28 }
 0x405   : > { %vm957_vm12 = vmor %vm955_vm11, %vm956_vm10 }
 0x406   : > { %v952_v30 = vsub.f32 1.0, %v951_v29  ;;  %v1104_v41 = vpop.xlane.xlu2 %1103 }
 0x407   : > { %2346 = vrcp.f32 %v1104_v41  ;;  %v1119_v61 = vand.u32 2147483648, %v1104_v41  ;;  %vm1113_vm3 = vweird.f32 %v1104_v41  ;;  %v1117_v63 = vand.u32 2147483647, %v1104_v41 }
 0x408   : > { %v953_v32 = vmul.f32 %v2345_v28, %v952_v30 }
 0x409   : > { %v1120_v3 = vor.u32 1.1754944e-38, %v1119_v61  ;;  %vm1118_vm5 = vcmp.eq.f32.partialorder %v1117_v63, 8.507059e+37 }
 0x40a   : > { %v954_v34 = vadd.f32 %v2345_v28, %v953_v32 }
 0x40c   : > { %v958_v36 = vsel %vm957_vm12, %v2345_v28, %v954_v34 }
 0x40d   : > { %v963_v37 = vsel %vm960_vm13, %v962_v35, %v958_v36  ;;  %v2347_v43 = vpop.eup %2346 }
 0x40e   : > { %v978_v38 = vmul.f32 %v2339_v16, %v963_v37  ;;  %v1109_v44 = vmul.f32 %v2347_v43, %v1104_v41  ;;  %vm1114_vm1 = vweird.f32 %v2347_v43 }
 0x40f   : > { %vm1115_vm4 = vmor %vm1113_vm3, %vm1114_vm1 }
 0x410   : > { %2177 = vmatmul.msk.f32.vlgmr.msra.gmra.mxu3 %vm878_vm9, %v978_v38  ;;  %v1110_v46 = vsub.f32 1.0, %v1109_v44 }
 0x411   : > { %1159 = vmatpush.msra.mxu3 %v1139_v39 }
 0x412   : > { %v1111_v50 = vmul.f32 %v2347_v43, %v1110_v46 }
 0x414   : > { %v1061_v40 = vpop.permute.xlu1 %1060  ;;  %v1112_v58 = vadd.f32 %v2347_v43, %v1111_v50 }
 0x415   : > { %2182 = vmatmul.msk.f32.vlgmr.msrb.gmra.mxu2 %vm878_vm9, %v1061_v40 }
 0x416   : > { %v1116_v1 = vsel %vm1115_vm4, %v2347_v43, %v1112_v58 }
 0x417   : > { %v1121_v4 = vsel %vm1118_vm5, %v1120_v3, %v1116_v1 }
 0x418   : > { %v1136_v5 = vmul.f32 %v3008_v19, %v1121_v4 }
 0x445   : > { %v949_v42 = vpop.xlane.xlu2 %948 }
 0x446   : > { %2348 = vrcp.f32 %v949_v42  ;;  %v975_v49 = vand.u32 2147483648, %v949_v42  ;;  %v973_v52 = vand.u32 2147483647, %v949_v42  ;;  %vm969_vm15 = vweird.f32 %v949_v42 }
 0x448   : > { %v976_v56 = vor.u32 1.1754944e-38, %v975_v49  ;;  %vm974_vm2 = vcmp.eq.f32.partialorder %v973_v52, 8.507059e+37 }
 0x44c   : > { %v2349_v45 = vpop.eup %2348 }
 0x44d   : > { %v965_v47 = vmul.f32 %v2349_v45, %v949_v42  ;;  %vm970_vm14 = vweird.f32 %v2349_v45  ;;  %v1251_v2 = vpop.permute.xlu2 %1250 }
 0x44e   : > { %vm971_vm0 = vmor %vm969_vm15, %vm970_vm14 }
 0x44f   : > { %v966_v48 = vsub.f32 1.0, %v965_v47 }
 0x451   : > { %v967_v51 = vmul.f32 %v2349_v45, %v966_v48 }
 0x453   : > { %v968_v55 = vadd.f32 %v2349_v45, %v967_v51 }
 0x455   : > { %v972_v60 = vsel %vm971_vm0, %v2349_v45, %v968_v55 }
 0x456   : > { %v977_v62 = vsel %vm974_vm2, %v976_v56, %v972_v60 }
 0x457   : > { %v979_v0 = vmul.f32 %v2343_v25, %v977_v62 }
 0x459   : > { %2178 = vmatmul.msk.f32.vlgmr.msrb.gmra.mxu3 %vm878_vm9, %v979_v0 }
 0x45a   : > { %2189 = vmatpush.xpose.msk.msrb.mxu3 %vm878_vm9, %v1251_v2 }
 0x461   : > { %2183 = vmatmul.msk.f32.vlgmr.msra.gmra.mxu3 %vm878_vm9, %v1136_v5 }
 0x469   : > { %2190 = vmatmul.msk.f32.vlgmr.msrb.gmra.mxu3 %vm878_vm9, %v1249_v6 }
 0x493   : > { %v1003_v8 = vpop.f32.mrf.mxu3 }
 0x494   : > { %2187 = vmatmul.msk.f32.vlgmr.msra.gmra.mxu0 %vm878_vm9, %v1003_v8 }
 0x498   : > { %v1085_v9 = vpop.f32.mrf.mxu2 }
 0x499   : > { %v1089_v10 = vmul.f32 0.35355338, %v1085_v9  ;;  %v873_v9 = vld [vmem:[%s2924_s18 + $0x10] sm:$0xff] }
 0x49a   : > { %1427 = vmatpush.msrb.mxu2 %v873_v9 }
 0x49b   : > { %v1093_v11 = vsel %vm878_vm9, %v1089_v10, -inf }
 0x49c   : > { %1094 = vmax.xlane.f32.xlu2 %v1093_v11 }
 0x4b4   : > { %1276 = vrot.lane.b32.xlu2 %v2983_v59, %s2656_s11 }
 0x4dc   : > { %v1029_v13 = vpop.f32.mrf.mxu3 }
 0x4dd   : > { %2188 = vmatmul.msk.f32.gmra.mxu0 %vm878_vm9, %v1029_v13 }
 0x4e4   : > { %v1161_v14 = vpop.f32.mrf.mxu3 }
 0x4e5   : > { %2185 = vmatmul.msk.f32.vlgmr.msra.gmra.mxu2 %vm878_vm9, %v1161_v14 }
 0x4ec   : > { %v1273_v15 = vpop.f32.mrf.mxu3 }
 0x4ed   : > { %v1304_v16 = vmul.f32 0.35355338, %v1273_v15 }
 0x4ef   : > { %v1306_v17 = vsel %vm878_vm9, %v1304_v16, -inf }
 0x4f0   : > { %1307 = vmax.xlane.f32.xlu1 %v1306_v17 }
 0x509   : > { %1164 = vrot.lane.b32.xlu1 %v2983_v59, %s2657_s16  ;;  %s3234_s16 = sld [smem:[#allocation34_spill]] }
 0x50f   : > { %v1095_v18 = vpop.xlane.xlu2 %1094 }
 0x510   : > { %v1097_v19 = vsub.f32 %v1089_v10, %v1095_v18 }
 0x511   : > { %1439 = vrot.lane.b32.xlu1 %v2978_v57, %s2659_s28  ;;  %v3054_v0 = vpop.f32.mrf.mxu0 }
 0x512   : > { %v1100_v20 = vmul.f32 1.442695, %v1097_v19 }
 0x514   : > { %2350 = vpow2.f32 %v1100_v20 }
 0x517   : > { %v1277_v43 = vpop.permute.xlu2 %1276 }
 0x519   : > { %1465 = vrot.lane.b32.xlu1 %v2983_v59, %s2660_s27 }
 0x51a   : > { %v2351_v21 = vpop.eup %2350 }
 0x51b   : > { %v1105_v22 = vsel %vm878_vm9, %v2351_v21, 0.0 }
 0x51c   : > { %1106 = vadd.xlane.f32.xlu0 %v1105_v22 }
 0x530   : > { %1278 = vrot.lane.b32.xlu0 %v2983_v59, %s2658_s12  ;;  %s1946_s12 = sshll.u32 %s3234_s16, 4  ;;  %s1947_s12 = int_to_ptr.hbm [resolvable:$true] %s1946_s12 }
 0x538   : > { %1354 = vrot.lane.b32.xlu0 %v2978_v57, %s2661_s10 }
 0x540   : > { %1437 = vrot.lane.b32.xlu0 %v2978_v57, %s2660_s27 }
 0x55a   : > { %v3057_v2 = vpop.f32.mrf.mxu0 }
 0x563   : > { %v1308_v23 = vpop.xlane.xlu1 %1307 }
 0x564   : > { %v1312_v24 = vsub.f32 %v1304_v16, %v1308_v23 }
 0x566   : > { %v1314_v25 = vmul.f32 1.442695, %v1312_v24 }
 0x568   : > { %2352 = vpow2.f32 %v1314_v25 }
 0x56e   : > { %v2353_v26 = vpop.eup %2352 }
 0x56f   : > { %v1318_v27 = vsel %vm878_vm9, %v2353_v26, 0.0 }
 0x570   : > { %1319 = vadd.xlane.f32.xlu2 %v1318_v27 }
 0x57b   : > { %v1165_v28 = vpop.permute.xlu1 %1164 }
 0x57c   : > { %1185 = vmatpush.msrb.mxu1 %v1165_v28 }
 0x583   : > { %v1440_v29 = vpop.permute.xlu1 %1439 }
 0x584   : > { %2197 = vmatpush.xpose.msk.msrb.mxu0 %vm878_vm9, %v1440_v29 }
 0x588   : > { %1467 = vrot.lane.b32.xlu2 %v2983_v59, %s2659_s28 }
 0x58b   : > { %v1466_v63 = vpop.permute.xlu1 %1465 }
 0x58f   : > { %v1107_v30 = vpop.xlane.xlu0 %1106 }
 0x590   : > { %2354 = vrcp.f32 %v1107_v30  ;;  %v1133_v34 = vand.u32 2147483648, %v1107_v30  ;;  %v1131_v36 = vand.u32 2147483647, %v1107_v30  ;;  %vm1127_vm7 = vweird.f32 %v1107_v30 }
 0x592   : > { %v1134_v38 = vor.u32 1.1754944e-38, %v1133_v34  ;;  %vm1132_vm11 = vcmp.eq.f32.partialorder %v1131_v36, 8.507059e+37 }
 0x596   : > { %v2355_v31 = vpop.eup %2354 }
 0x597   : > { %v1123_v32 = vmul.f32 %v2355_v31, %v1107_v30  ;;  %vm1128_vm6 = vweird.f32 %v2355_v31 }
 0x598   : > { %vm1129_vm10 = vmor %vm1127_vm7, %vm1128_vm6 }
 0x599   : > { %v1124_v33 = vsub.f32 1.0, %v1123_v32 }
 0x59b   : > { %v1125_v35 = vmul.f32 %v2355_v31, %v1124_v33 }
 0x59d   : > { %v1126_v37 = vadd.f32 %v2355_v31, %v1125_v35 }
 0x59f   : > { %v1130_v39 = vsel %vm1129_vm10, %v2355_v31, %v1126_v37 }
 0x5a0   : > { %v1135_v40 = vsel %vm1132_vm11, %v1134_v38, %v1130_v39 }
 0x5a1   : > { %v1137_v41 = vmul.f32 %v2351_v21, %v1135_v40 }
 0x5a2   : > { %v1279_v42 = vpop.permute.xlu0 %1278 }
 0x5a3   : > { %2184 = vmatmul.msk.f32.vlgmr.msrb.gmra.mxu1 %vm878_vm9, %v1137_v41 }
 0x5a4   : > { %2191 = vmatpush.xpose.msk.msra.mxu1 %vm878_vm9, %v1279_v42 }
 0x5aa   : > { %v1355_v44 = vpop.permute.xlu0 %1354 }
 0x5ab   : > { %2192 = vmatmul.msk.f32.vlgmr.msra.gmra.mxu1 %vm878_vm9, %v1277_v43  ;;  %1375 = vmatpush.msra.mxu3 %v1355_v44 }
 0x5b2   : > { %v1438_v45 = vpop.permute.xlu0 %1437 }
 0x5b3   : > { %2198 = vmatmul.msk.f32.vlgmr.msrb.gmra.mxu0 %vm878_vm9, %v1438_v45 }
 0x5e3   : > { %v1320_v46 = vpop.xlane.xlu2 %1319 }
 0x5e4   : > { %2356 = vrcp.f32 %v1320_v46  ;;  %v1335_v51 = vand.u32 2147483648, %v1320_v46  ;;  %v1333_v55 = vand.u32 2147483647, %v1320_v46  ;;  %vm1329_vm13 = vweird.f32 %v1320_v46 }
 0x5e6   : > { %v1336_v58 = vor.u32 1.1754944e-38, %v1335_v51  ;;  %vm1334_vm15 = vcmp.eq.f32.partialorder %v1333_v55, 8.507059e+37 }
 0x5ea   : > { %v2357_v47 = vpop.eup %2356 }
 0x5eb   : > { %v1325_v48 = vmul.f32 %v2357_v47, %v1320_v46  ;;  %v1468_v49 = vpop.permute.xlu2 %1467  ;;  %vm1330_vm12 = vweird.f32 %v2357_v47 }
 0x5ec   : > { %2199 = vmatpush.xpose.msk.msrb.mxu3 %vm878_vm9, %v1468_v49  ;;  %vm1331_vm14 = vmor %vm1329_vm13, %vm1330_vm12 }
 0x5ed   : > { %v1326_v50 = vsub.f32 1.0, %v1325_v48 }
 0x5ef   : > { %v1327_v52 = vmul.f32 %v2357_v47, %v1326_v50 }
 0x5f1   : > { %v1328_v56 = vadd.f32 %v2357_v47, %v1327_v52 }
 0x5f3   : > { %v1332_v60 = vsel %vm1331_vm14, %v2357_v47, %v1328_v56 }
 0x5f4   : > { %v1337_v61 = vsel %vm1334_vm15, %v1336_v58, %v1332_v60 }
 0x5f5   : > { %v1352_v62 = vmul.f32 %v2353_v26, %v1337_v61 }
 0x5f7   : > { %2193 = vmatmul.msk.f32.vlgmr.msra.gmra.mxu3 %vm878_vm9, %v1352_v62 }
 0x5ff   : > { %2200 = vmatmul.msk.f32.vlgmr.msrb.gmra.mxu3 %vm878_vm9, %v1466_v63 }
 0x620   : > { %v1187_v1 = vpop.f32.mrf.mxu1 }
 0x621   : > { %2186 = vmatmul.msk.f32.gmra.mxu2 %vm878_vm9, %v1187_v1 }
 0x628   : > { %v1301_v3 = vpop.f32.mrf.mxu1 }
 0x629   : > { %v1305_v4 = vmul.f32 0.35355338, %v1301_v3 }
 0x62b   : > { %v1309_v5 = vsel %vm878_vm9, %v1305_v4, -inf }
 0x62c   : > { %1310 = vmax.xlane.f32.xlu2 %v1309_v5 }
 0x630   : > { %v1462_v6 = vpop.f32.mrf.mxu0 }
 0x631   : > { %v1493_v7 = vmul.f32 0.35355338, %v1462_v6 }
 0x633   : > { %v1495_v8 = vsel %vm878_vm9, %v1493_v7, -inf }
 0x634   : > { %1496 = vmax.xlane.f32.xlu0 %v1495_v8  ;;  %v874_v8 = vld [vmem:[%s2924_s18 + $0x18] sm:$0xff]  ;;  %s3227_s18 = scalar_lea.vmem %s3183_s6, %s2909_s7 }
 0x635   : > { %1616 = vmatpush.msra.mxu3 %v874_v8 }
 0x67a   : > { %v1377_v10 = vpop.f32.mrf.mxu3 }
 0x67b   : > { %2195 = vmatmul.msk.f32.vlgmr.msrb.gmra.mxu2 %vm878_vm9, %v1377_v10 }
 0x682   : > { %v1490_v11 = vpop.f32.mrf.mxu3 }
 0x683   : > { %v1494_v12 = vmul.f32 0.35355338, %v1490_v11 }
 0x685   : > { %v1498_v13 = vsel %vm878_vm9, %v1494_v12, -inf }
 0x686   : > { %1499 = vmax.xlane.f32.xlu1 %v1498_v13 }
 0x69f   : > { %v1311_v14 = vpop.xlane.xlu2 %1310 }
 0x6a0   : > { %v1313_v15 = vsub.f32 %v1305_v4, %v1311_v14 }
 0x6a2   : > { %v1316_v16 = vmul.f32 1.442695, %v1313_v15 }
 0x6a4   : > { %2358 = vpow2.f32 %v1316_v16 }
 0x6a7   : > { %v1497_v17 = vpop.xlane.xlu0 %1496 }
 0x6a8   : > { %v1501_v18 = vsub.f32 %v1493_v7, %v1497_v17  ;;  %v2331_v17 = vld [vmem:[%s3227_s18] ss:$0 sm:$0xff] }
 0x6aa   : > { %v2359_v19 = vpop.eup %2358  ;;  %v1503_v20 = vmul.f32 1.442695, %v1501_v18 }
 0x6ab   : > { %v1321_v21 = vsel %vm878_vm9, %v2359_v19, 0.0 }
 0x6ac   : > { %2360 = vpow2.f32 %v1503_v20  ;;  %1322 = vadd.xlane.f32.xlu2 %v1321_v21 }
 0x6b2   : > { %v2361_v22 = vpop.eup %2360 }
 0x6b3   : > { %v1507_v23 = vsel %vm878_vm9, %v2361_v22, 0.0 }
 0x6b4   : > { %1508 = vadd.xlane.f32.xlu0 %v1507_v23 }
 0x6c4   : > { %1380 = vrot.lane.b32.xlu2 %v2983_v59, %s2661_s10 }
 0x6c8   : > { %1543 = vrot.lane.b32.xlu0 %v2978_v57, %s2662_s13 }
 0x6f9   : > { %v1500_v24 = vpop.xlane.xlu1 %1499 }
 0x6fa   : > { %v1502_v25 = vsub.f32 %v1494_v12, %v1500_v24  ;;  %v1213_v12 = vpop.f32.mrf.mxu2 }
 0x6fb   : > { %v1243_v15 = vadd.f32 %v3054_v0, %v1213_v12 }
 0x6fc   : > { %v1505_v26 = vmul.f32 1.442695, %v1502_v25 }
 0x6fe   : > { %2362 = vpow2.f32 %v1505_v26 }
 0x702   : > { %v1216_v13 = vpop.f32.mrf.mxu2 }
 0x703   : > { %v1246_v24 = vadd.f32 %v3057_v2, %v1216_v13 }
 0x704   : > { %v2363_v27 = vpop.eup %2362 }
 0x705   : > { %v1510_v28 = vsel %vm878_vm9, %v2363_v27, 0.0 }
 0x706   : > { %1511 = vadd.xlane.f32.xlu1 %v1510_v28 }
 0x70a   : > { %v1429_v14 = vpop.f32.mrf.mxu2 }
 0x70b   : > { %v1435_v16 = vadd.f32 %v1429_v14, %v1243_v15 }
 0x71f   : > { %v1323_v29 = vpop.xlane.xlu2 %1322  ;;  %1569 = vrot.lane.b32.xlu1 %v2983_v59, %s2662_s13 }
 0x720   : > { %2364 = vrcp.f32 %v1323_v29  ;;  %v1349_v57 = vand.u32 2147483648, %v1323_v29  ;;  %v1347_v36 = vand.u32 2147483647, %v1323_v29  ;;  %vm1343_vm1 = vweird.f32 %v1323_v29 }
 0x722   : > { %v1350_v39 = vor.u32 1.1754944e-38, %v1349_v57  ;;  %vm1348_vm3 = vcmp.eq.f32.partialorder %v1347_v36, 8.507059e+37 }
 0x726   : > { %v2365_v30 = vpop.eup %2364 }
 0x727   : > { %v1339_v31 = vmul.f32 %v2365_v30, %v1323_v29  ;;  %v1381_v32 = vpop.permute.xlu2 %1380  ;;  %v1509_v33 = vpop.xlane.xlu0 %1508  ;;  %vm1344_vm0 = vweird.f32 %v2365_v30 }
 0x728   : > { %2366 = vrcp.f32 %v1509_v33  ;;  %1401 = vmatpush.msrb.mxu1 %v1381_v32  ;;  %vm1345_vm2 = vmor %vm1343_vm1, %vm1344_vm0  ;;  %v1524_v44 = vand.u32 2147483648, %v1509_v33  ;;  %v1522_v46 = vand.u32 2147483647, %v1509_v33  ;;  %vm1518_vm5 = vweird.f32 %v1509_v33 }
 0x729   : > { %v1340_v34 = vsub.f32 1.0, %v1339_v31 }
 0x72a   : > { %v1525_v48 = vor.u32 1.1754944e-38, %v1524_v44  ;;  %vm1523_vm7 = vcmp.eq.f32.partialorder %v1522_v46, 8.507059e+37  ;;  %v1698_v44 = vld [vmem:[%s2933_s0 + $0x8] sm:$0xff] }
 0x72b   : > { %v1341_v35 = vmul.f32 %v2365_v30, %v1340_v34 }
 0x72d   : > { %v1342_v37 = vadd.f32 %v2365_v30, %v1341_v35 }
 0x72e   : > { %v2367_v38 = vpop.eup %2366 }
 0x72f   : > { %v1346_v40 = vsel %vm1345_vm2, %v2365_v30, %v1342_v37  ;;  %v1514_v59 = vmul.f32 %v2367_v38, %v1509_v33  ;;  %vm1519_vm4 = vweird.f32 %v2367_v38  ;;  %v2663_v30 = vmov 32.0  }
 0x730   : > { %v1351_v41 = vsel %vm1348_vm3, %v1350_v39, %v1346_v40  ;;  %vm1520_vm6 = vmor %vm1518_vm5, %vm1519_vm4 }
 0x731   : > { %v1515_v42 = vsub.f32 1.0, %v1514_v59  ;;  %v1353_v43 = vmul.f32 %v2359_v19, %v1351_v41 }
 0x733   : > { %v1516_v45 = vmul.f32 %v2367_v38, %v1515_v42  ;;  %2194 = vmatmul.msk.f32.vlgmr.msrb.gmra.mxu1 %vm878_vm9, %v1353_v43  ;;  %v1700_v42 = vld [vmem:[%s2933_s0 + $0x18] sm:$0xff]  ;;  %v1699_v43 = vld [vmem:[%s2933_s0 + $0x10] sm:$0xff] }
 0x735   : > { %v1517_v47 = vadd.f32 %v2367_v38, %v1516_v45  ;;  %v1697_v45 = vld [vmem:[%s2933_s0] sm:$0xff]  ;;  %s3229_s0 = scalar_lea.vmem [#allocation11], %s2893_s26  ;;  %s2665_s26 = smov [#allocation14]  }
 0x736   : > { %s1944_s7 = sshll.u32 %s2665_s26, 4  ;;  %s1945_s7 = int_to_ptr.vmem [resolvable:$true] %s1944_s7 }
 0x737   : > { %v1521_v49 = vsel %vm1520_vm6, %v2367_v38, %v1517_v47 }
 0x738   : > { %v1526_v50 = vsel %vm1523_vm7, %v1525_v48, %v1521_v49 }
 0x739   : > { %v1541_v51 = vmul.f32 %v2361_v22, %v1526_v50 }
 0x73a   : > { %v1544_v52 = vpop.permute.xlu0 %1543 }
 0x73b   : > { %1564 = vmatpush.msra.mxu1 %v1544_v52 }
 0x73c   : > { %2201 = vmatmul.msk.f32.vlgmr.msra.gmra.mxu1 %vm878_vm9, %v1541_v51 }
 0x73d   : > { %1723 = vmatpush.msrb.mxu1 %v1700_v42  ;;  %v1829_v42 = vld [vmem:[%s2943_s24] sm:$0xff] }
 0x73f   : > { %1724 = vmatpush.msrb.mxu1 %v1699_v43 }
 0x741   : > { %1725 = vmatpush.msrb.mxu1 %v1698_v44 }
 0x743   : > { %1726 = vmatpush.msrb.mxu1 %v1697_v45 }
 0x779   : > { %v1512_v55 = vpop.xlane.xlu1 %1511 }
 0x77a   : > { %2368 = vrcp.f32 %v1512_v55  ;;  %v1538_v63 = vand.u32 2147483648, %v1512_v55  ;;  %vm1532_vm11 = vweird.f32 %v1512_v55  ;;  %v1536_v1 = vand.u32 2147483647, %v1512_v55 }
 0x77b   : > { %2370 = vrcp.f32 %v2663_v30 }
 0x77c   : > { %v1539_v4 = vor.u32 1.1754944e-38, %v1538_v63  ;;  %vm1537_vm13 = vcmp.eq.f32.partialorder %v1536_v1, 8.507059e+37 }
 0x780   : > { %v2369_v56 = vpop.eup %2368 }
 0x781   : > { %v1528_v58 = vmul.f32 %v2369_v56, %v1512_v55  ;;  %vm1533_vm10 = vweird.f32 %v2369_v56  ;;  %v2371_v31 = vpop.eup %2370 }
 0x782   : > { %vm1534_vm12 = vmor %vm1532_vm11, %vm1533_vm10  ;;  %v1643_v32 = vmul.f32 32.0, %v2371_v31  ;;  %vm1841_vm11 = vcmask 523264  }
 0x783   : > { %v1529_v60 = vsub.f32 1.0, %v1528_v58  ;;  %v2332_v58 = vld [vmem:[%s3228_s15] ss:$0 sm:$0xff] }
 0x785   : > { %v1530_v61 = vmul.f32 %v2369_v56, %v1529_v60 }
 0x787   : > { %v1531_v62 = vadd.f32 %v2369_v56, %v1530_v61 }
 0x789   : > { %v1535_v3 = vsel %vm1534_vm12, %v2369_v56, %v1531_v62  ;;  %v2333_v62 = vld [vmem:[%s3229_s0] ss:$0 sm:$0xff] }
 0x78a   : > { %v1540_v5 = vsel %vm1537_vm13, %v1539_v4, %v1535_v3 }
 0x78b   : > { %v1542_v7 = vmul.f32 %v2363_v27, %v1540_v5 }
 0x791   : > { %v1570_v6 = vpop.permute.xlu1 %1569 }
 0x792   : > { %1590 = vmatpush.msra.mxu0 %v1570_v6 }
 0x793   : > { %2202 = vmatmul.msk.f32.vlgmr.msra.gmra.mxu0 %vm878_vm9, %v1542_v7 }
 0x7b0   : > { %v1403_v9 = vpop.f32.mrf.mxu1 }
 0x7b1   : > { %2196 = vmatmul.msk.f32.gmra.mxu2 %vm878_vm9, %v1403_v9 }
 0x7b9   : > { %v1566_v10 = vpop.f32.mrf.mxu1 }
 0x7ba   : > { %2203 = vmatmul.msk.f32.vlgmr.msra.gmra.mxu3 %vm878_vm9, %v1566_v10 }
 0x810   : > { %v1592_v11 = vpop.f32.mrf.mxu0 }
 0x811   : > { %2204 = vmatmul.msk.f32.gmra.mxu3 %vm878_vm9, %v1592_v11  ;;  %vm1647_vm9 = vweird.f32 %v2371_v31 }
 0x834   : > { %v1432_v23 = vpop.f32.mrf.mxu2 }
 0x835   : > { %v1436_v25 = vadd.f32 %v1432_v23, %v1246_v24 }
 0x83d   : > { %v1618_v18 = vpop.f32.mrf.mxu3 }
 0x83e   : > { %v1624_v19 = vadd.f32 %v1618_v18, %v1435_v16  ;;  %v2664_v16 = vmov 1.4142135  }
 0x840   : > { %v1630_v20 = vadd.f32 %v2331_v17, %v1624_v19 }
 0x842   : > { %v1632_v21 = vadd.f32 %v1630_v20, %v2965_v53  ;;  %v1644_v53 = vsub.f32 1.0, %v1643_v32 }
 0x844   : > { %v1636_v22 = vsel %vm841_vm8, %v1632_v21, 0.0  ;;  %v1645_v33 = vmul.f32 %v2371_v31, %v1644_v53 }
 0x845   : > { %1637 = vadd.xlane.f32.xlu0 %v1636_v22  ;;  %v3118_v22 = vld [vmem:[%s747_s17] ss:$0 sm:$0xff] }
 0x846   : > { %v1646_v34 = vadd.f32 %v2371_v31, %v1645_v33  ;;  %v1834_v33 = vld [vmem:[%s2943_s24 + $0x28] sm:$0xff] }
 0x848   : > { %v3089_v2 = vsel %vm1647_vm9, %v2371_v31, %v1646_v34  ;;  %v1835_v31 = vld [vmem:[%s2943_s24 + $0x30] sm:$0xff] }
 0x894   : > { %v1621_v26 = vpop.f32.mrf.mxu3 }
 0x895   : > { %v1625_v0 = vadd.f32 %v1621_v26, %v1436_v25 }
 0x897   : > { %v1631_v27 = vadd.f32 %v2331_v17, %v1625_v0 }
 0x899   : > { %v1633_v28 = vadd.f32 %v1631_v27, %v2969_v54 }
 0x89b   : > { %v1639_v29 = vsel %vm841_vm8, %v1633_v28, 0.0 }
 0x89c   : > { %1640 = vadd.xlane.f32.xlu2 %v1639_v29 }
 0x8b8   : > { %v1638_v57 = vpop.xlane.xlu0 %1637 }
 0x8b9   : > { %v1649_v35 = vmul.f32 %v3089_v2, %v1638_v57 }
 0x8bb   : > { %v1651_v54 = vsub.f32 %v1632_v21, %v1649_v35  ;;  %v1833_v35 = vld [vmem:[%s2943_s24 + $0x20] sm:$0xff] }
 0x8bd   : > { %v1653_v36 = vmul.f32 %v1651_v54, %v1651_v54 }
 0x8bf   : > { %v1655_v37 = vsel %vm841_vm8, %v1653_v36, 0.0  ;;  %v1832_v36 = vld [vmem:[%s2943_s24 + $0x18] sm:$0xff] }
 0x8c0   : > { %1656 = vadd.xlane.f32.xlu1 %v1655_v37 }
 0x90f   : > { %v1641_v38 = vpop.xlane.xlu2 %1640 }
 0x910   : > { %v1650_v39 = vmul.f32 %v3089_v2, %v1641_v38 }
 0x912   : > { %v1652_v40 = vsub.f32 %v1633_v28, %v1650_v39  ;;  %v1836_v28 = vld [vmem:[%s2943_s24 + $0x38] sm:$0xff]  ;;  %v1831_v39 = vld [vmem:[%s2943_s24 + $0x10] sm:$0xff] }
 0x913   : > { %1856 = vmatpush.msra.mxu2 %v1836_v28 }
 0x914   : > { %v1654_v59 = vmul.f32 %v1652_v40, %v1652_v40 }
 0x915   : > { %1857 = vmatpush.msra.mxu2 %v1835_v31 }
 0x916   : > { %v1658_v41 = vsel %vm841_vm8, %v1654_v59, 0.0  ;;  %v1830_v59 = vld [vmem:[%s2943_s24 + $0x8] sm:$0xff] }
 0x917   : > { %1659 = vadd.xlane.f32.xlu2 %v1658_v41  ;;  %1858 = vmatpush.msra.mxu2 %v1834_v33 }
 0x919   : > { %1859 = vmatpush.msra.mxu2 %v1833_v35 }
 0x91b   : > { %1860 = vmatpush.msra.mxu2 %v1832_v36 }
 0x91d   : > { %1861 = vmatpush.msra.mxu2 %v1831_v39 }
 0x91f   : > { %1862 = vmatpush.msra.mxu2 %v1830_v59 }
 0x921   : > { %1863 = vmatpush.msra.mxu2 %v1829_v42 }
 0x933   : > { %v1657_v46 = vpop.xlane.xlu1 %1656 }
 0x934   : > { %v1661_v47 = vmul.f32 %v1657_v46, %v3089_v2 }
 0x936   : > { %v1663_v48 = vadd.f32 1e-12, %v1661_v47 }
 0x938   : > { %2372 = vrsqrt.f32 %v1663_v48  ;;  %vm1671_vm15 = vweird.f32 %v1663_v48 }
 0x93e   : > { %v2373_v49 = vpop.eup %2372 }
 0x93f   : > { %v1666_v50 = vmul.f32 %v2373_v49, %v1663_v48  ;;  %vm1672_vm14 = vweird.f32 %v2373_v49 }
 0x940   : > { %vm1673_vm0 = vmor %vm1671_vm15, %vm1672_vm14 }
 0x941   : > { %v1667_v51 = vmul.f32 %v2373_v49, %v1666_v50 }
 0x943   : > { %v1668_v52 = vmul.f32 0.5, %v1667_v51 }
 0x945   : > { %v1669_v55 = vsub.f32 1.5, %v1668_v52 }
 0x947   : > { %v1670_v56 = vmul.f32 %v2373_v49, %v1669_v55 }
 0x949   : > { %v1674_v60 = vsel %vm1673_vm0, %v2373_v49, %v1670_v56 }
 0x94a   : > { %v1685_v61 = vmul.f32 %v1674_v60, %v1651_v54 }
 0x94c   : > { %v1690_v63 = vmul.f32 %v2332_v58, %v1685_v61 }
 0x94e   : > { %v3104_v1 = vadd.f32 %v2333_v62, %v1690_v63 }
 0x950   : > { %2205 = vmatmul.msk.f32.vlgmr.msrb.gmra.mxu1 %vm841_vm8, %v3104_v1 }
 0x98a   : > { %v1660_v3 = vpop.xlane.xlu2 %1659 }
 0x98b   : > { %v1662_v4 = vmul.f32 %v1660_v3, %v3089_v2 }
 0x98d   : > { %v1664_v5 = vadd.f32 1e-12, %v1662_v4 }
 0x98f   : > { %2374 = vrsqrt.f32 %v1664_v5  ;;  %vm1681_vm2 = vweird.f32 %v1664_v5 }
 0x990   : > { %2376 = vrcp.f32 %v2664_v16 }
 0x995   : > { %v2375_v6 = vpop.eup %2374 }
 0x996   : > { %v1676_v7 = vmul.f32 %v2375_v6, %v1664_v5  ;;  %vm1682_vm1 = vweird.f32 %v2375_v6  ;;  %v2377_v17 = vpop.eup %2376 }
 0x997   : > { %vm1683_vm3 = vmor %vm1681_vm2, %vm1682_vm1  ;;  %v1737_v18 = vmul.f32 1.4142135, %v2377_v17  ;;  %vm1741_vm4 = vweird.f32 %v2377_v17 }
 0x998   : > { %v1677_v8 = vmul.f32 %v2375_v6, %v1676_v7 }
 0x999   : > { %v1738_v19 = vsub.f32 1.0, %v1737_v18 }
 0x99a   : > { %v1678_v9 = vmul.f32 0.5, %v1677_v8 }
 0x99b   : > { %v1739_v20 = vmul.f32 %v2377_v17, %v1738_v19 }
 0x99c   : > { %v1679_v10 = vsub.f32 1.5, %v1678_v9 }
 0x99d   : > { %v1740_v21 = vadd.f32 %v2377_v17, %v1739_v20 }
 0x99e   : > { %v1680_v11 = vmul.f32 %v2375_v6, %v1679_v10 }
 0x99f   : > { %v3120_v24 = vsel %vm1741_vm4, %v2377_v17, %v1740_v21 }
 0x9a0   : > { %v1684_v12 = vsel %vm1683_vm3, %v2375_v6, %v1680_v11 }
 0x9a1   : > { %v1686_v13 = vmul.f32 %v1684_v12, %v1652_v40 }
 0x9a3   : > { %v1691_v14 = vmul.f32 %v2332_v58, %v1686_v13 }
 0x9a5   : > { %v3109_v15 = vadd.f32 %v2333_v62, %v1691_v14 }
 0x9a7   : > { %2206 = vmatmul.msk.f32.gmra.mxu1 %vm841_vm8, %v3109_v15 }
 0x9cd   : > { %v1728_v23 = vpop.f32.mrf.mxu1 }
 0x9ce   : > { %v1729_v25 = vadd.f32 %v3118_v22, %v1728_v23 }
 0x9d0   : > { %v1743_v26 = vmul.f32 %v3120_v24, %v1729_v25  ;;  %v1734_v8 = vmul.f32 0.5, %v1729_v25 }
 0x9d2   : > { %v1745_v0 = vmul.f32 %v1743_v26, %v1743_v26 }
 0x9d4   : > { %v1746_v27 = vmin.f32 %v1745_v0, 16.0 }
 0x9d6   : > { %v1747_v29 = vmul.f32 2.1237322e-06, %v1746_v27  ;;  %v1758_v30 = vmul.f32 3.8918573e-05, %v1746_v27 }
 0x9d8   : > { %v1748_v32 = vadd.f32 0.00028619796, %v1747_v29  ;;  %v1759_v53 = vadd.f32 0.001143296, %v1758_v30 }
 0x9da   : > { %v1749_v34 = vmul.f32 %v1748_v32, %v1746_v27  ;;  %v1760_v57 = vmul.f32 %v1759_v53, %v1746_v27 }
 0x9dc   : > { %v1761_v54 = vadd.f32 0.014752088, %v1760_v57  ;;  %v1750_v37 = vadd.f32 0.0036580483, %v1749_v34 }
 0x9de   : > { %v1762_v38 = vmul.f32 %v1761_v54, %v1746_v27  ;;  %v1751_v41 = vmul.f32 %v1750_v37, %v1746_v27 }
 0x9e0   : > { %v1763_v40 = vadd.f32 0.112945676, %v1762_v38  ;;  %v1752_v45 = vadd.f32 0.05243302, %v1751_v41 }
 0x9e2   : > { %v1764_v43 = vmul.f32 %v1763_v40, %v1746_v27  ;;  %v1753_v48 = vmul.f32 %v1752_v45, %v1746_v27 }
 0x9e4   : > { %v1765_v44 = vadd.f32 0.4994258, %v1764_v43  ;;  %v1754_v49 = vadd.f32 0.18741608, %v1753_v48  ;;  %v2335_v48 = vld [vmem:[%s755_s9] ss:$0 sm:$0xff] }
 0x9e6   : > { %v1766_v46 = vmul.f32 %v1765_v44, %v1746_v27  ;;  %v1755_v51 = vmul.f32 %v1754_v49, %v1746_v27 }
 0x9e8   : > { %v1767_v47 = vadd.f32 1.0, %v1766_v46  ;;  %v1756_v58 = vadd.f32 1.1283791, %v1755_v51 }
 0x9ea   : > { %2378 = vrcp.f32 %v1767_v47  ;;  %v1779_v56 = vand.u32 2147483648, %v1767_v47  ;;  %v1777_v61 = vand.u32 2147483647, %v1767_v47  ;;  %vm1773_vm6 = vweird.f32 %v1767_v47 }
 0x9eb   : > { %v1757_v3 = vmul.f32 %v1756_v58, %v1743_v26 }
 0x9ec   : > { %v1780_v63 = vor.u32 1.1754944e-38, %v1779_v56  ;;  %vm1778_vm10 = vcmp.eq.f32.partialorder %v1777_v61, 8.507059e+37 }
 0x9f0   : > { %v2379_v50 = vpop.eup %2378 }
 0x9f1   : > { %v1769_v52 = vmul.f32 %v2379_v50, %v1767_v47  ;;  %vm1774_vm5 = vweird.f32 %v2379_v50 }
 0x9f2   : > { %vm1775_vm7 = vmor %vm1773_vm6, %vm1774_vm5  ;;  %vm1934_vm5 = vcmask 1040384   ;;  %vm1936_vm6 = vcmask 254976  }
 0x9f3   : > { %v1770_v55 = vsub.f32 1.0, %v1769_v52 }
 0x9f5   : > { %v1771_v60 = vmul.f32 %v2379_v50, %v1770_v55 }
 0x9f7   : > { %v1772_v62 = vadd.f32 %v2379_v50, %v1771_v60 }
 0x9f9   : > { %v1776_v4 = vsel %vm1775_vm7, %v2379_v50, %v1772_v62 }
 0x9fa   : > { %v1781_v5 = vsel %vm1778_vm10, %v1780_v63, %v1776_v4 }
 0x9fb   : > { %v1782_v6 = vmul.f32 %v1781_v5, %v1757_v3 }
 0x9fd   : > { %v2207_v7 = vclamps-f32 %v1782_v6, 1.0 }
 0x9ff   : > { %v1825_v9 = vadd.f32 1.0, %v2207_v7 }
 0xa01   : > { %v1827_v10 = vmul.f32 %v1825_v9, %v1734_v8 }
 0xa03   : > { %2209 = vmatmul.msk.f32.vlgmr.msra.gmra.mxu2 %vm1841_vm11, %v1827_v10 }
 0xa24   : > { %v1731_v11 = vpop.f32.mrf.mxu1 }
 0xa25   : > { %v1732_v12 = vadd.f32 %v3118_v22, %v1731_v11 }
 0xa27   : > { %v1744_v13 = vmul.f32 %v3120_v24, %v1732_v12  ;;  %v1735_v45 = vmul.f32 0.5, %v1732_v12 }
 0xa29   : > { %v1785_v14 = vmul.f32 %v1744_v13, %v1744_v13 }
 0xa2b   : > { %v1786_v16 = vmin.f32 %v1785_v14, 16.0 }
 0xa2d   : > { %v1787_v17 = vmul.f32 2.1237322e-06, %v1786_v16  ;;  %v1798_v18 = vmul.f32 3.8918573e-05, %v1786_v16 }
 0xa2f   : > { %v1788_v19 = vadd.f32 0.00028619796, %v1787_v17  ;;  %v1799_v20 = vadd.f32 0.001143296, %v1798_v18  ;;  %v2336_v18 = vld [vmem:[%s758_s21] ss:$0 sm:$0xff] }
 0xa31   : > { %v1789_v21 = vmul.f32 %v1788_v19, %v1786_v16  ;;  %v1800_v23 = vmul.f32 %v1799_v20, %v1786_v16 }
 0xa33   : > { %v1801_v26 = vadd.f32 0.014752088, %v1800_v23  ;;  %v1790_v25 = vadd.f32 0.0036580483, %v1789_v21  ;;  %v2337_v21 = vld [vmem:[%s3233_s25] ss:$0 sm:$0xff] }
 0xa35   : > { %v1802_v0 = vmul.f32 %v1801_v26, %v1786_v16  ;;  %v1791_v28 = vmul.f32 %v1790_v25, %v1786_v16 }
 0xa37   : > { %v1803_v27 = vadd.f32 0.112945676, %v1802_v0  ;;  %v1792_v31 = vadd.f32 0.05243302, %v1791_v28 }
 0xa39   : > { %v1804_v29 = vmul.f32 %v1803_v27, %v1786_v16  ;;  %v1793_v53 = vmul.f32 %v1792_v31, %v1786_v16 }
 0xa3b   : > { %v1805_v30 = vadd.f32 0.4994258, %v1804_v29  ;;  %v1794_v24 = vadd.f32 0.18741608, %v1793_v53 }
 0xa3d   : > { %v1806_v32 = vmul.f32 %v1805_v30, %v1786_v16  ;;  %v1795_v34 = vmul.f32 %v1794_v24, %v1786_v16 }
 0xa3f   : > { %v1807_v22 = vadd.f32 1.0, %v1806_v32  ;;  %v1796_v36 = vadd.f32 1.1283791, %v1795_v34 }
 0xa41   : > { %2380 = vrcp.f32 %v1807_v22  ;;  %v1819_v54 = vand.u32 2147483648, %v1807_v22  ;;  %v1817_v38 = vand.u32 2147483647, %v1807_v22  ;;  %vm1813_vm13 = vweird.f32 %v1807_v22 }
 0xa42   : > { %v1797_v59 = vmul.f32 %v1796_v36, %v1744_v13 }
 0xa43   : > { %v1820_v40 = vor.u32 1.1754944e-38, %v1819_v54  ;;  %vm1818_vm14 = vcmp.eq.f32.partialorder %v1817_v38, 8.507059e+37 }
 0xa47   : > { %v2381_v33 = vpop.eup %2380 }
 0xa48   : > { %v1809_v57 = vmul.f32 %v2381_v33, %v1807_v22  ;;  %vm1814_vm12 = vweird.f32 %v2381_v33 }
 0xa49   : > { %vm1815_vm9 = vmor %vm1813_vm13, %vm1814_vm12 }
 0xa4a   : > { %v1810_v35 = vsub.f32 1.0, %v1809_v57 }
 0xa4c   : > { %v1811_v37 = vmul.f32 %v2381_v33, %v1810_v35 }
 0xa4e   : > { %v1812_v39 = vadd.f32 %v2381_v33, %v1811_v37 }
 0xa50   : > { %v1816_v41 = vsel %vm1815_vm9, %v2381_v33, %v1812_v39 }
 0xa51   : > { %v1821_v42 = vsel %vm1818_vm14, %v1820_v40, %v1816_v41 }
 0xa52   : > { %v1822_v43 = vmul.f32 %v1821_v42, %v1797_v59 }
 0xa54   : > { %v2208_v44 = vclamps-f32 %v1822_v43, 1.0 }
 0xa56   : > { %v1826_v46 = vadd.f32 1.0, %v2208_v44 }
 0xa58   : > { %v1828_v47 = vmul.f32 %v1826_v46, %v1735_v45 }
 0xa5a   : > { %2210 = vmatmul.msk.f32.gmra.mxu2 %vm1841_vm11, %v1828_v47 }
 0xa86   : > { %v1865_v49 = vpop.f32.mrf.mxu2 }
 0xa87   : > { %v1866_v50 = vadd.f32 %v2335_v48, %v1865_v49 }
 0xa89   : > { %v1871_v51 = vadd.f32 %v1866_v50, %v3104_v1 }
 0xa8b   : > { %v1875_v52 = vsel %vm841_vm8, %v1871_v51, 0.0 }
 0xa8c   : > { %1876 = vadd.xlane.f32.xlu1 %v1875_v52 }
 0xadd   : > { %v1868_v55 = vpop.f32.mrf.mxu2 }
 0xade   : > { %v1869_v56 = vadd.f32 %v2335_v48, %v1868_v55 }
 0xae0   : > { %v1872_v58 = vadd.f32 %v1869_v56, %v3109_v15 }
 0xae2   : > { %v1878_v60 = vsel %vm841_vm8, %v1872_v58, 0.0 }
 0xae3   : > { %1879 = vadd.xlane.f32.xlu0 %v1878_v60 }
 0xaff   : > { %v1877_v61 = vpop.xlane.xlu1 %1876 }
 0xb00   : > { %v1881_v62 = vmul.f32 %v1877_v61, %v3089_v2 }
 0xb02   : > { %v1883_v63 = vsub.f32 %v1871_v51, %v1881_v62 }
 0xb04   : > { %v1885_v3 = vmul.f32 %v1883_v63, %v1883_v63 }
 0xb06   : > { %v1887_v4 = vsel %vm841_vm8, %v1885_v3, 0.0 }
 0xb07   : > { %1888 = vadd.xlane.f32.xlu0 %v1887_v4 }
 0xb56   : > { %v1880_v5 = vpop.xlane.xlu0 %1879 }
 0xb57   : > { %v1882_v1 = vmul.f32 %v1880_v5, %v3089_v2 }
 0xb59   : > { %v1884_v6 = vsub.f32 %v1872_v58, %v1882_v1 }
 0xb5b   : > { %v1886_v7 = vmul.f32 %v1884_v6, %v1884_v6 }
 0xb5d   : > { %v1890_v8 = vsel %vm841_vm8, %v1886_v7, 0.0 }
 0xb5e   : > { %1891 = vadd.xlane.f32.xlu2 %v1890_v8 }
 0xb7a   : > { %v1889_v15 = vpop.xlane.xlu0 %1888 }
 0xb7b   : > { %v1893_v9 = vmul.f32 %v1889_v15, %v3089_v2 }
 0xb7d   : > { %v1895_v10 = vadd.f32 1e-12, %v1893_v9 }
 0xb7f   : > { %2382 = vrsqrt.f32 %v1895_v10  ;;  %vm1903_vm0 = vweird.f32 %v1895_v10 }
 0xb85   : > { %v2383_v11 = vpop.eup %2382 }
 0xb86   : > { %v1898_v12 = vmul.f32 %v2383_v11, %v1895_v10  ;;  %vm1904_vm15 = vweird.f32 %v2383_v11 }
 0xb87   : > { %vm1905_vm1 = vmor %vm1903_vm0, %vm1904_vm15 }
 0xb88   : > { %v1899_v13 = vmul.f32 %v2383_v11, %v1898_v12 }
 0xb8a   : > { %v1900_v14 = vmul.f32 0.5, %v1899_v13 }
 0xb8c   : > { %v1901_v16 = vsub.f32 1.5, %v1900_v14 }
 0xb8e   : > { %v1902_v17 = vmul.f32 %v2383_v11, %v1901_v16 }
 0xb90   : > { %v1906_v19 = vsel %vm1905_vm1, %v2383_v11, %v1902_v17 }
 0xb91   : > { %v1917_v20 = vmul.f32 %v1906_v19, %v1883_v63 }
 0xb93   : > { %v1922_v23 = vmul.f32 %v2336_v18, %v1917_v20 }
 0xb95   : > { %v1927_v26 = vadd.f32 %v2337_v21, %v1922_v23 }
 0xb97   : > { %1929 = vst.msk [vmem:[#allocation2] sm:$0xff] %vm841_vm8, %v1927_v26 }
 0xbd1   : > { %v1892_v25 = vpop.xlane.xlu2 %1891 }
 0xbd2   : > { %v1894_v0 = vmul.f32 %v1892_v25, %v3089_v2 }
 0xbd4   : > { %v1896_v27 = vadd.f32 1e-12, %v1894_v0 }
 0xbd6   : > { %2384 = vrsqrt.f32 %v1896_v27  ;;  %vm1913_vm3 = vweird.f32 %v1896_v27 }
 0xbdc   : > { %v2385_v28 = vpop.eup %2384 }
 0xbdd   : > { %v1908_v29 = vmul.f32 %v2385_v28, %v1896_v27  ;;  %vm1914_vm2 = vweird.f32 %v2385_v28 }
 0xbde   : > { %vm1915_vm4 = vmor %vm1913_vm3, %vm1914_vm2 }
 0xbdf   : > { %v1909_v30 = vmul.f32 %v2385_v28, %v1908_v29 }
 0xbe1   : > { %v1910_v31 = vmul.f32 0.5, %v1909_v30 }
 0xbe3   : > { %v1911_v32 = vsub.f32 1.5, %v1910_v31 }
 0xbe5   : > { %v1912_v22 = vmul.f32 %v2385_v28, %v1911_v32 }
 0xbe7   : > { %v1916_v53 = vsel %vm1915_vm4, %v2385_v28, %v1912_v22 }
 0xbe8   : > { %v1918_v24 = vmul.f32 %v1916_v53, %v1884_v6 }
 0xbea   : > { %v1923_v33 = vmul.f32 %v2336_v18, %v1918_v24 }
 0xbec   : > { %v1928_v34 = vadd.f32 %v2337_v21, %v1923_v33 }
 0xbee   : > { %1930 = vst.msk [vmem:[#allocation2 + $0x8] sm:$0xff] %vm841_vm8, %v1928_v34  ;;  %v1932_v2 = vrot.slane %v1928_v34, 7 }
 0xbf0   : > { %v1935_v57 = vsel %vm1934_vm5, %v1927_v26, %v1932_v2 }
 0xbf1   : > { %1937 = vst.msk [vmem:[#allocation14] sm:$0x3] %vm1936_vm6, %v1935_v57 }
 0xbf2   : > { %2238 = dma.vmem_to_hbm [thread:$0]  (%p2268_p4), %s1945_s7, 32, %s1947_s12, [#allocation5]  }
 0xbf3   : > { %2627 = dma.done.wait (%p2268_p4), [#allocation5], 32  }
 0xbf4   : > { %2629 = vsyncadd (%p2268_p4), [#allocation5], 4294967264 }
 0xbf5 PF: > { %s3235_s21 = sld [smem:[#allocation21_spill]]  ;;  %s3238_s18 = smov %s2636_s19 }
 0xbf6   : > { %s3236_s28 = sld [smem:[#allocation20_spill]] }
 0xbf7   : > { %s3237_s20 = sld [smem:[#allocation22_spill]] }
 0xbfb   : > { %p31_p5 = scmp.ge.s32.totalorder %s3235_s21, 4  }
 0xbfc   : > { %s3239_s19 = smov %s3236_s28 }
 0xbfd   :  { %33 = sbr.rel (!%p31_p5) target bundleno = 21 (0x15), region = 185 }
 0xc02   :  { %1960 = vsyncpa [#allocation4], 1 }
 0xc03   :  { %1962 = vsyncpa [#allocation4 + $0x1], 1 }
 0xc04   :  { %1963 = vsyncpa [#allocation7], 1 }
 0xc05   :  { %1964 = vsyncpa [#allocation10], 1 }
 0xc06   :  { %1966 = vsyncpa [#allocation10 + $0x1], 1 }
 0xc07   :  { %1967 = vsyncpa [#allocation13], 1 }
 0xc08   :  { %1969 = vsyncpa [#allocation13 + $0x1], 1 }
 0xc09   :  { %1970 = vsyncpa [#allocation5], 1 }
 0xc0a   :  { %1972 = vsyncpa [#allocation5 + $0x1], 1 }

</bundles_post_ra>
